<compile_context>
chip_gen: v7x
topology: tpu7x:2x2x1
jax: 0.10.0
libtpu: 0.0.40
codegen_flags: <defaults>
</compile_context>

<pallas_src>
import functools

import numpy as np
import jax
import jax.numpy as jnp
from jax import lax
from jax.experimental import pallas as pl
from jax.experimental.pallas import tpu as pltpu


# --------------------------- host-side constants ---------------------------

def _dct_matrix_8() -> np.ndarray:
    # A such that  DCT(X)  = A.T @ (X - 128) @ A
    #              IDCT(Y) = A @ Y @ A.T + 128
    # which matches DiffJPEG's dct_8x8 / idct_8x8 tensordot formulation.
    x = np.arange(8, dtype=np.float64)
    u = np.arange(8, dtype=np.float64)
    c = np.cos((2.0 * x[:, None] + 1.0) * u[None, :] * np.pi / 16.0)  # C[x, u]
    alpha = np.array([1.0 / np.sqrt(2.0)] + [1.0] * 7)
    return (0.5 * c * alpha[None, :]).astype(np.float32)


# Same (transposed) tables as the PyTorch DiffJPEG module.
_Y_TABLE = np.array(
    [[16, 11, 10, 16, 24, 40, 51, 61],
     [12, 12, 14, 19, 26, 58, 60, 55],
     [14, 13, 16, 24, 40, 57, 69, 56],
     [14, 17, 22, 29, 51, 87, 80, 62],
     [18, 22, 37, 56, 68, 109, 103, 77],
     [24, 35, 55, 64, 81, 104, 113, 92],
     [49, 64, 78, 87, 103, 121, 120, 101],
     [72, 92, 95, 98, 112, 100, 103, 99]], dtype=np.float32).T

_C_TABLE = np.full((8, 8), 99.0, dtype=np.float32)
_C_TABLE[:4, :4] = np.array(
    [[17, 18, 24, 47],
     [18, 21, 26, 66],
     [24, 26, 56, 99],
     [47, 66, 99, 99]], dtype=np.float32).T


def _quality_to_factor(quality: float) -> float:
    if quality < 50:
        q = 5000.0 / quality
    else:
        q = 200.0 - quality * 2.0
    return q / 100.0


def _pick_batch_tile(n: int, h: int, w: int) -> int:
    """Images per grid step: amortize per-step overhead while keeping the
    per-step image blocks small and (when possible) leaving >= 2 grid steps so
    a v7x chip can shard the parallel batch axis over both TensorCores."""
    per_img_bytes = 3 * h * w * 4
    cap = int(max(1, min(8, (4 << 20) // max(per_img_bytes, 1))))
    divisors = [b for b in range(1, cap + 1) if n % b == 0]
    for b in reversed(divisors):
        if n // b >= 2:
            return b
    return divisors[-1]


# -------------------------------- kernel -----------------------------------

def _make_diffjpeg_kernel(batch_tile: int, differentiable: bool):
    def _round(v):
        r = jnp.round(v)                       # round-half-even, like torch.round
        if differentiable:
            return r + (v - r) ** 3            # diff_round
        return r

    def _dot(a, b):
        return jnp.dot(a, b, preferred_element_type=jnp.float32)

    # Color coefficients with the *255 (input) scale folded in; the /255
    # (output) scale is folded into the IDCT / upsample matrices on the host.
    kr, kg, kb = 0.299 * 255.0, 0.587 * 255.0, 0.114 * 255.0
    br, bg, bb = -0.168736 * 255.0, -0.331264 * 255.0, 0.5 * 255.0
    rr, rg, rb = 0.5 * 255.0, -0.418688 * 255.0, -0.081312 * 255.0
    c128 = 128.0 / 255.0

    def kernel(x_ref,
               fdl_r_ref, fd_c_ref, idl_r_ref, id_c_ref, fdc_r_ref, idc_r_ref,
               yq_ref, yq_inv_ref, cq_ref, cq_inv_ref,
               pool_r_ref, pool_c_ref, up_r_ref, up_c_ref,
               o_ref):
        # Resident constants (loaded once per grid step, shared by all B imgs).
        FDL_R = fdl_r_ref[...]   # (H, H)      luma fwd-DCT rows   = kron(I, A.T)
        FD_C = fd_c_ref[...]     # (W, W)      fwd-DCT cols        = kron(I, A)
        IDL_R = idl_r_ref[...]   # (H, H)      luma IDCT rows * (1/255)
        ID_C = id_c_ref[...]     # (W, W)      IDCT cols           = kron(I, A.T)
        FDC_R = fdc_r_ref[...]   # (H/2, H/2)  chroma fwd-DCT rows
        IDC_R = idc_r_ref[...]   # (H/2, H/2)  chroma IDCT rows
        YQ = yq_ref[...]         # (H, W)      luma quant table * factor
        YQI = yq_inv_ref[...]    # (H, W)      its reciprocal
        CQ = cq_ref[...]         # (H/2, W)    packed chroma quant table * factor
        CQI = cq_inv_ref[...]    # (H/2, W)    its reciprocal
        PO_R = pool_r_ref[...]   # (H/2, H)    2x avg-pool rows
        PO_C = pool_c_ref[...]   # (W, W/2)    2x avg-pool cols (pre-transposed)
        UP_R = up_r_ref[...]     # (H, H/2)    nearest-2x upsample rows
        UP_C = up_c_ref[...]     # (W, 2W)     packed upsample cols * (4/255)

        # Fully-unrolled batch-tile loop (equivalent to fori_loop(unroll=True));
        # each iteration ends with its stores, so live ranges do not accumulate.
        for b in range(batch_tile):
            r = x_ref[b, 0].astype(jnp.float32)
            g = x_ref[b, 1].astype(jnp.float32)
            bl = x_ref[b, 2].astype(jnp.float32)

            # RGB -> YCbCr (JPEG), already centered (-128) for the DCT; the
            # chroma +128/-128 offsets cancel through pool/DCT/IDCT/upsample.
            yc = kr * r + kg * g + kb * bl - 128.0
            cbc = br * r + bg * g + bb * bl
            crc = rr * r + rg * g + rb * bl

            # ---- luma: blocked 8x8 DCT -> quant -> dequant -> IDCT (/255) ----
            coeff = _dot(_dot(FDL_R, yc), FD_C)
            deq = _round(coeff * YQI) * YQ
            y01 = _dot(_dot(IDL_R, deq), ID_C)          # == (y_rec - 128) / 255

            # ---- chroma: 2x2 avg-pool, lane-pack cb|cr, JPEG once, upsample --
            cb_ds = _dot(_dot(PO_R, cbc), PO_C)          # (H/2, W/2)
            cr_ds = _dot(_dot(PO_R, crc), PO_C)          # (H/2, W/2)
            packed = jnp.concatenate([cb_ds, cr_ds], axis=1)   # (H/2, W)
            ccoeff = _dot(_dot(FDC_R, packed), FD_C)
            cdeq = _round(ccoeff * CQI) * CQ
            crec = _dot(_dot(IDC_R, cdeq), ID_C)         # centered, 0..255 units
            cup = _dot(_dot(UP_R, crec), UP_C)           # (H, 2W), already /255
            half = cup.shape[1] // 2
            cb01 = cup[:, :half]
            cr01 = cup[:, half:]

            # ---- YCbCr -> RGB, clip to [0,1] (the /255 is already folded) ----
            base = y01 + c128
            r_out = base + 1.402 * cr01
            g_out = base - 0.344136 * cb01 - 0.714136 * cr01
            b_out = base + 1.772 * cb01

            o_ref[b, 0] = jnp.clip(r_out, 0.0, 1.0).astype(o_ref.dtype)
            o_ref[b, 1] = jnp.clip(g_out, 0.0, 1.0).astype(o_ref.dtype)
            o_ref[b, 2] = jnp.clip(b_out, 0.0, 1.0).astype(o_ref.dtype)

    return kernel


# ------------------------------- wrapper ------------------------------------

@functools.partial(jax.jit, static_argnames=("quality", "differentiable"))
def diff_jpeg_forward(x, *, quality: int = 80, differentiable: bool = True):
    """Pallas implementation of DiffJPEG.forward (compress + decompress)."""
    n, c, h, w = x.shape
    if c != 3 or h % 16 != 0 or w % 16 != 0:
        raise ValueError("DiffJPEG expects NCHW RGB with H, W multiples of 16")
    # Note: for best TPU lane utilisation W should be a multiple of 128 (the
    # default DiffJPEG 128x128 images are ideal); smaller W still runs correctly.
    factor = float(_quality_to_factor(quality))
    inv255 = 1.0 / 255.0

    a = _dct_matrix_8()
    at = a.T.copy()

    def kron_eye(k, m):
        return np.kron(np.eye(k, dtype=np.float32), m)

    # Pre-transposed / pre-scaled constants -> no .T, no divides in the kernel.
    fdl_r = kron_eye(h // 8, at)                     # (H, H)   luma fwd rows
    fd_c = kron_eye(w // 8, a)                       # (W, W)   fwd cols (shared)
    idl_r = kron_eye(h // 8, a) * inv255             # (H, H)   luma inv rows /255
    id_c = kron_eye(w // 8, at)                      # (W, W)   inv cols (shared)
    fdc_r = kron_eye(h // 16, at)                    # (H/2, H/2) chroma fwd rows
    idc_r = kron_eye(h // 16, a)                     # (H/2, H/2) chroma inv rows

    yq = np.tile(_Y_TABLE, (h // 8, w // 8)) * factor      # (H, W)
    cq = np.tile(_C_TABLE, (h // 16, w // 8)) * factor     # (H/2, W) packed cb|cr
    yq_inv = 1.0 / yq
    cq_inv = 1.0 / cq

    half_row = np.array([[0.5, 0.5]], dtype=np.float32)
    pool_r = kron_eye(h // 2, half_row)                    # (H/2, H)
    pw = kron_eye(w // 2, half_row)                        # (W/2, W)
    pool_c = pw.T.copy()                                   # (W, W/2)
    up_r = pool_r.T.copy()                                 # (H, H/2)
    up_c = np.kron(np.eye(2), pw) * (4.0 * inv255)         # (W, 2W), scaled

    consts = tuple(jnp.asarray(m, jnp.float32) for m in (
        fdl_r, fd_c, idl_r, id_c, fdc_r, idc_r,
        yq, yq_inv, cq, cq_inv,
        pool_r, pool_c, up_r, up_c))

    bt = _pick_batch_tile(n, h, w)
    img_spec = pl.BlockSpec((bt, 3, h, w), lambda i: (i, 0, 0, 0))
    const_specs = [pl.BlockSpec(m.shape, lambda i: (0, 0)) for m in consts]

    # Per-step VMEM: 2*(2*bt*3*H*W*4) image buffers + ~2x resident constants;
    # ~8 MiB at bt=8, 128x128 -> fits default scoped VMEM on v5e/v6e/v7x.
    out = pl.pallas_call(
        _make_diffjpeg_kernel(bt, differentiable),
        out_shape=jax.ShapeDtypeStruct((n, 3, h, w), x.dtype),
        grid_spec=pltpu.PrefetchScalarGridSpec(
            num_scalar_prefetch=0,
            grid=(n // bt,),
            in_specs=[img_spec] + const_specs,
            out_specs=img_spec,
        ),
        compiler_params=pltpu.CompilerParams(
            dimension_semantics=("parallel",),
        ),
    )(x, *consts)
    return out


# --------------------- pure-JAX reference (for checking) --------------------

def _diff_jpeg_ref(x, quality=80, differentiable=True):
    """Pure-JAX reference that mirrors the PyTorch DiffJPEG module op-by-op."""
    hp = lax.Precision.HIGHEST
    x = jnp.asarray(x, jnp.float32)
    n, _, h, w = x.shape
    factor = _quality_to_factor(quality)

    def rounding(v):
        r = jnp.round(v)
        return r + (v - r) ** 3 if differentiable else r

    img = jnp.transpose(x * 255.0, (0, 2, 3, 1))
    m1 = jnp.array([[0.299, 0.587, 0.114],
                    [-0.168736, -0.331264, 0.5],
                    [0.5, -0.418688, -0.081312]], jnp.float32).T
    ycc = jnp.tensordot(img, m1, axes=1, precision=hp) + jnp.array(
        [0.0, 128.0, 128.0], jnp.float32)
    y, cb, cr = ycc[..., 0], ycc[..., 1], ycc[..., 2]

    def avgpool2(p):
        return p.reshape(n, h // 2, 2, w // 2, 2).mean(axis=(2, 4))
    cb_s, cr_s = avgpool2(cb), avgpool2(cr)

    idx = np.arange(8)
    t_dct = (np.cos((2 * idx[:, None, None, None] + 1) * idx[None, None, :, None] * np.pi / 16)
             * np.cos((2 * idx[None, :, None, None] + 1) * idx[None, None, None, :] * np.pi / 16))
    alpha = np.array([1.0 / np.sqrt(2.0)] + [1.0] * 7)
    scale = jnp.asarray(np.outer(alpha, alpha) * 0.25, jnp.float32)
    alpha2 = jnp.asarray(np.outer(alpha, alpha), jnp.float32)
    t_dct = jnp.asarray(t_dct, jnp.float32)
    t_idct = jnp.transpose(t_dct, (2, 3, 0, 1))
    y_tab = jnp.asarray(_Y_TABLE * factor)
    c_tab = jnp.asarray(_C_TABLE * factor)

    def blockify(im, hh, ww):
        im = im.reshape(n, hh // 8, 8, ww // 8, 8)
        return jnp.transpose(im, (0, 1, 3, 2, 4)).reshape(n, -1, 8, 8)

    def deblockify(bl, hh, ww):
        bl = bl.reshape(n, hh // 8, ww // 8, 8, 8)
        return jnp.transpose(bl, (0, 1, 3, 2, 4)).reshape(n, hh, ww)

    def jpeg_plane(im, tab, hh, ww):
        bl = blockify(im, hh, ww)
        coeff = scale * jnp.tensordot(bl - 128.0, t_dct, axes=2, precision=hp)
        q = rounding(coeff / tab) * tab
        rec = 0.25 * jnp.tensordot(q * alpha2, t_idct, axes=2, precision=hp) + 128.0
        return deblockify(rec, hh, ww)

    y_r = jpeg_plane(y, y_tab, h, w)
    cb_r = jpeg_plane(cb_s, c_tab, h // 2, w // 2)
    cr_r = jpeg_plane(cr_s, c_tab, h // 2, w // 2)

    up = lambda p: jnp.repeat(jnp.repeat(p, 2, axis=1), 2, axis=2)
    ycc2 = jnp.stack([y_r, up(cb_r), up(cr_r)], axis=-1)
    m2 = jnp.array([[1.0, 0.0, 1.402],
                    [1.0, -0.344136, -0.714136],
                    [1.0, 1.772, 0.0]], jnp.float32).T
    rgb = jnp.tensordot(ycc2 + jnp.array([0.0, -128.0, -128.0], jnp.float32),
                        m2, axes=1, precision=hp)
    rgb = jnp.transpose(rgb, (0, 3, 1, 2))
    return jnp.clip(rgb, 0.0, 255.0) / 255.0


if __name__ == "__main__":
    key = jax.random.PRNGKey(0)
    # Small NCHW RGB batch in [0, 1]; H, W multiples of 16 so the 2x-subsampled
    # chroma planes split cleanly into 8x8 JPEG blocks.
    x = jax.random.uniform(key, (2, 3, 16, 16), dtype=jnp.float32)

    y = diff_jpeg_forward(x)          # quality=80, differentiable rounding
    jax.block_until_ready(y)

    y_ref = _diff_jpeg_ref(x)
    assert y.shape == x.shape and y.dtype == x.dtype

    diff = jnp.abs(y.astype(jnp.float32) - y_ref)
    mean_err = float(jnp.mean(diff))
    max_err = float(jnp.max(diff))
    # Essentially exact; loose max bound only to tolerate the (rare) case of a
    # DCT coefficient sitting numerically on a rounding boundary.
    assert mean_err < 2e-3, (mean_err, max_err)
    assert max_err < 8e-2, (mean_err, max_err)
    assert 0.0 <= float(jnp.min(y)) and float(jnp.max(y)) <= 1.0

    print("KERNEL_OK")
</pallas_src>

<mosaic_0001>
module attributes {stable_mosaic.version = 11 : i64} {
  func.func @kernel(%arg0: i32, %arg1: memref<1x3x16x16xf32, #tpu.memory_space<vmem>>, %arg2: memref<16x16xf32, #tpu.memory_space<vmem>>, %arg3: memref<16x16xf32, #tpu.memory_space<vmem>>, %arg4: memref<16x16xf32, #tpu.memory_space<vmem>>, %arg5: memref<16x16xf32, #tpu.memory_space<vmem>>, %arg6: memref<8x8xf32, #tpu.memory_space<vmem>>, %arg7: memref<8x8xf32, #tpu.memory_space<vmem>>, %arg8: memref<16x16xf32, #tpu.memory_space<vmem>>, %arg9: memref<16x16xf32, #tpu.memory_space<vmem>>, %arg10: memref<8x16xf32, #tpu.memory_space<vmem>>, %arg11: memref<8x16xf32, #tpu.memory_space<vmem>>, %arg12: memref<8x16xf32, #tpu.memory_space<vmem>>, %arg13: memref<16x8xf32, #tpu.memory_space<vmem>>, %arg14: memref<16x8xf32, #tpu.memory_space<vmem>>, %arg15: memref<16x32xf32, #tpu.memory_space<vmem>>, %arg16: memref<1x3x16x16xf32, #tpu.memory_space<vmem>>) attributes {dimension_semantics = [#tpu.dimension_semantics<parallel>], iteration_bounds = array<i64: 2>, scalar_prefetch = 0 : i64, scratch_operands = 0 : i64, tpu.core_type = #tpu.core_type<tc>, window_params = [{transform_indices = @transform_0, window_bounds = array<i64: 1, 3, 16, 16>}, {pipeline_mode = #tpu.pipeline_mode<synchronous>, transform_indices = @transform_1, window_bounds = array<i64: 16, 16>}, {pipeline_mode = #tpu.pipeline_mode<synchronous>, transform_indices = @transform_2, window_bounds = array<i64: 16, 16>}, {pipeline_mode = #tpu.pipeline_mode<synchronous>, transform_indices = @transform_3, window_bounds = array<i64: 16, 16>}, {pipeline_mode = #tpu.pipeline_mode<synchronous>, transform_indices = @transform_4, window_bounds = array<i64: 16, 16>}, {pipeline_mode = #tpu.pipeline_mode<synchronous>, transform_indices = @transform_5, window_bounds = array<i64: 8, 8>}, {pipeline_mode = #tpu.pipeline_mode<synchronous>, transform_indices = @transform_6, window_bounds = array<i64: 8, 8>}, {pipeline_mode = #tpu.pipeline_mode<synchronous>, transform_indices = @transform_7, window_bounds = array<i64: 16, 16>}, {pipeline_mode = #tpu.pipeline_mode<synchronous>, transform_indices = @transform_8, window_bounds = array<i64: 16, 16>}, {pipeline_mode = #tpu.pipeline_mode<synchronous>, transform_indices = @transform_9, window_bounds = array<i64: 8, 16>}, {pipeline_mode = #tpu.pipeline_mode<synchronous>, transform_indices = @transform_10, window_bounds = array<i64: 8, 16>}, {pipeline_mode = #tpu.pipeline_mode<synchronous>, transform_indices = @transform_11, window_bounds = array<i64: 8, 16>}, {pipeline_mode = #tpu.pipeline_mode<synchronous>, transform_indices = @transform_12, window_bounds = array<i64: 16, 8>}, {pipeline_mode = #tpu.pipeline_mode<synchronous>, transform_indices = @transform_13, window_bounds = array<i64: 16, 8>}, {pipeline_mode = #tpu.pipeline_mode<synchronous>, transform_indices = @transform_14, window_bounds = array<i64: 16, 32>}, {transform_indices = @transform_15, window_bounds = array<i64: 1, 3, 16, 16>}]} {
    %c0 = arith.constant 0 : index
    %c0_0 = arith.constant 0 : index
    %0 = vector.load %arg2[%c0, %c0_0] : memref<16x16xf32, #tpu.memory_space<vmem>>, vector<16x16xf32>
    %c0_1 = arith.constant 0 : index
    %c0_2 = arith.constant 0 : index
    %1 = vector.load %arg3[%c0_1, %c0_2] : memref<16x16xf32, #tpu.memory_space<vmem>>, vector<16x16xf32>
    %c0_3 = arith.constant 0 : index
    %c0_4 = arith.constant 0 : index
    %2 = vector.load %arg4[%c0_3, %c0_4] : memref<16x16xf32, #tpu.memory_space<vmem>>, vector<16x16xf32>
    %c0_5 = arith.constant 0 : index
    %c0_6 = arith.constant 0 : index
    %3 = vector.load %arg5[%c0_5, %c0_6] : memref<16x16xf32, #tpu.memory_space<vmem>>, vector<16x16xf32>
    %c0_7 = arith.constant 0 : index
    %c0_8 = arith.constant 0 : index
    %4 = vector.load %arg6[%c0_7, %c0_8] : memref<8x8xf32, #tpu.memory_space<vmem>>, vector<8x8xf32>
    %c0_9 = arith.constant 0 : index
    %c0_10 = arith.constant 0 : index
    %5 = vector.load %arg7[%c0_9, %c0_10] : memref<8x8xf32, #tpu.memory_space<vmem>>, vector<8x8xf32>
    %c0_11 = arith.constant 0 : index
    %c0_12 = arith.constant 0 : index
    %6 = vector.load %arg8[%c0_11, %c0_12] : memref<16x16xf32, #tpu.memory_space<vmem>>, vector<16x16xf32>
    %c0_13 = arith.constant 0 : index
    %c0_14 = arith.constant 0 : index
    %7 = vector.load %arg9[%c0_13, %c0_14] : memref<16x16xf32, #tpu.memory_space<vmem>>, vector<16x16xf32>
    %c0_15 = arith.constant 0 : index
    %c0_16 = arith.constant 0 : index
    %8 = vector.load %arg10[%c0_15, %c0_16] : memref<8x16xf32, #tpu.memory_space<vmem>>, vector<8x16xf32>
    %c0_17 = arith.constant 0 : index
    %c0_18 = arith.constant 0 : index
    %9 = vector.load %arg11[%c0_17, %c0_18] : memref<8x16xf32, #tpu.memory_space<vmem>>, vector<8x16xf32>
    %c0_19 = arith.constant 0 : index
    %c0_20 = arith.constant 0 : index
    %10 = vector.load %arg12[%c0_19, %c0_20] : memref<8x16xf32, #tpu.memory_space<vmem>>, vector<8x16xf32>
    %c0_21 = arith.constant 0 : index
    %c0_22 = arith.constant 0 : index
    %11 = vector.load %arg13[%c0_21, %c0_22] : memref<16x8xf32, #tpu.memory_space<vmem>>, vector<16x8xf32>
    %c0_23 = arith.constant 0 : index
    %c0_24 = arith.constant 0 : index
    %12 = vector.load %arg14[%c0_23, %c0_24] : memref<16x8xf32, #tpu.memory_space<vmem>>, vector<16x8xf32>
    %c0_25 = arith.constant 0 : index
    %c0_26 = arith.constant 0 : index
    %13 = vector.load %arg15[%c0_25, %c0_26] : memref<16x32xf32, #tpu.memory_space<vmem>>, vector<16x32xf32>
    %c0_27 = arith.constant 0 : index
    %c0_28 = arith.constant 0 : index
    %c0_29 = arith.constant 0 : index
    %c0_30 = arith.constant 0 : index
    %14 = vector.load %arg1[%c0_27, %c0_28, %c0_29, %c0_30] : memref<1x3x16x16xf32, #tpu.memory_space<vmem>>, vector<1x1x16x16xf32>
    %15 = vector.shape_cast %14 : vector<1x1x16x16xf32> to vector<16x16xf32>
    %c0_31 = arith.constant 0 : index
    %c1 = arith.constant 1 : index
    %c0_32 = arith.constant 0 : index
    %c0_33 = arith.constant 0 : index
    %16 = vector.load %arg1[%c0_31, %c1, %c0_32, %c0_33] : memref<1x3x16x16xf32, #tpu.memory_space<vmem>>, vector<1x1x16x16xf32>
    %17 = vector.shape_cast %16 : vector<1x1x16x16xf32> to vector<16x16xf32>
    %c0_34 = arith.constant 0 : index
    %c2 = arith.constant 2 : index
    %c0_35 = arith.constant 0 : index
    %c0_36 = arith.constant 0 : index
    %18 = vector.load %arg1[%c0_34, %c2, %c0_35, %c0_36] : memref<1x3x16x16xf32, #tpu.memory_space<vmem>>, vector<1x1x16x16xf32>
    %19 = vector.shape_cast %18 : vector<1x1x16x16xf32> to vector<16x16xf32>
    %cst = arith.constant 7.624500e+01 : f32
    %20 = vector.broadcast %cst : f32 to vector<16x16xf32>
    %21 = arith.mulf %20, %15 : vector<16x16xf32>
    %cst_37 = arith.constant 1.496850e+02 : f32
    %22 = vector.broadcast %cst_37 : f32 to vector<16x16xf32>
    %23 = arith.mulf %22, %17 : vector<16x16xf32>
    %24 = arith.addf %21, %23 : vector<16x16xf32>
    %cst_38 = arith.constant 2.907000e+01 : f32
    %25 = vector.broadcast %cst_38 : f32 to vector<16x16xf32>
    %26 = arith.mulf %25, %19 : vector<16x16xf32>
    %27 = arith.addf %24, %26 : vector<16x16xf32>
    %cst_39 = arith.constant 1.280000e+02 : f32
    %28 = vector.broadcast %cst_39 : f32 to vector<16x16xf32>
    %29 = arith.subf %27, %28 : vector<16x16xf32>
    %cst_40 = arith.constant -43.0276794 : f32
    %30 = vector.broadcast %cst_40 : f32 to vector<16x16xf32>
    %31 = arith.mulf %30, %15 : vector<16x16xf32>
    %cst_41 = arith.constant -84.4723205 : f32
    %32 = vector.broadcast %cst_41 : f32 to vector<16x16xf32>
    %33 = arith.mulf %32, %17 : vector<16x16xf32>
    %34 = arith.addf %31, %33 : vector<16x16xf32>
    %cst_42 = arith.constant 1.275000e+02 : f32
    %35 = vector.broadcast %cst_42 : f32 to vector<16x16xf32>
    %36 = arith.mulf %35, %19 : vector<16x16xf32>
    %37 = arith.addf %34, %36 : vector<16x16xf32>
    %cst_43 = arith.constant 1.275000e+02 : f32
    %38 = vector.broadcast %cst_43 : f32 to vector<16x16xf32>
    %39 = arith.mulf %38, %15 : vector<16x16xf32>
    %cst_44 = arith.constant -106.765442 : f32
    %40 = vector.broadcast %cst_44 : f32 to vector<16x16xf32>
    %41 = arith.mulf %40, %17 : vector<16x16xf32>
    %42 = arith.addf %39, %41 : vector<16x16xf32>
    %cst_45 = arith.constant -20.73456 : f32
    %43 = vector.broadcast %cst_45 : f32 to vector<16x16xf32>
    %44 = arith.mulf %43, %19 : vector<16x16xf32>
    %45 = arith.addf %42, %44 : vector<16x16xf32>
    %cst_46 = arith.constant dense<0.000000e+00> : vector<16x16xf32>
    %46 = tpu.matmul %0, %29, %cst_46 {dimension_numbers = #tpu.dot_dimension_numbers<[1], [0], [0], [1], [0, 0, 1, 1], [], []>} : vector<16x16xf32>, vector<16x16xf32>, vector<16x16xf32> -> vector<16x16xf32>
    %cst_47 = arith.constant dense<0.000000e+00> : vector<16x16xf32>
    %47 = tpu.matmul %46, %1, %cst_47 {dimension_numbers = #tpu.dot_dimension_numbers<[1], [0], [0], [1], [0, 0, 1, 1], [], []>} : vector<16x16xf32>, vector<16x16xf32>, vector<16x16xf32> -> vector<16x16xf32>
    %48 = arith.mulf %47, %7 : vector<16x16xf32>
    %49 = math.roundeven %48 : vector<16x16xf32>
    %50 = arith.subf %48, %49 : vector<16x16xf32>
    %51 = arith.mulf %50, %50 : vector<16x16xf32>
    %52 = arith.mulf %50, %51 : vector<16x16xf32>
    %53 = arith.addf %49, %52 : vector<16x16xf32>
    %54 = arith.mulf %53, %6 : vector<16x16xf32>
    %cst_48 = arith.constant dense<0.000000e+00> : vector<16x16xf32>
    %55 = tpu.matmul %2, %54, %cst_48 {dimension_numbers = #tpu.dot_dimension_numbers<[1], [0], [0], [1], [0, 0, 1, 1], [], []>} : vector<16x16xf32>, vector<16x16xf32>, vector<16x16xf32> -> vector<16x16xf32>
    %cst_49 = arith.constant dense<0.000000e+00> : vector<16x16xf32>
    %56 = tpu.matmul %55, %3, %cst_49 {dimension_numbers = #tpu.dot_dimension_numbers<[1], [0], [0], [1], [0, 0, 1, 1], [], []>} : vector<16x16xf32>, vector<16x16xf32>, vector<16x16xf32> -> vector<16x16xf32>
    %cst_50 = arith.constant dense<0.000000e+00> : vector<8x16xf32>
    %57 = tpu.matmul %10, %37, %cst_50 {dimension_numbers = #tpu.dot_dimension_numbers<[1], [0], [0], [1], [0, 0, 1, 1], [], []>} : vector<8x16xf32>, vector<16x16xf32>, vector<8x16xf32> -> vector<8x16xf32>
    %cst_51 = arith.constant dense<0.000000e+00> : vector<8x8xf32>
    %58 = tpu.matmul %57, %11, %cst_51 {dimension_numbers = #tpu.dot_dimension_numbers<[1], [0], [0], [1], [0, 0, 1, 1], [], []>} : vector<8x16xf32>, vector<16x8xf32>, vector<8x8xf32> -> vector<8x8xf32>
    %cst_52 = arith.constant dense<0.000000e+00> : vector<8x16xf32>
    %59 = tpu.matmul %10, %45, %cst_52 {dimension_numbers = #tpu.dot_dimension_numbers<[1], [0], [0], [1], [0, 0, 1, 1], [], []>} : vector<8x16xf32>, vector<16x16xf32>, vector<8x16xf32> -> vector<8x16xf32>
    %cst_53 = arith.constant dense<0.000000e+00> : vector<8x8xf32>
    %60 = tpu.matmul %59, %11, %cst_53 {dimension_numbers = #tpu.dot_dimension_numbers<[1], [0], [0], [1], [0, 0, 1, 1], [], []>} : vector<8x16xf32>, vector<16x8xf32>, vector<8x8xf32> -> vector<8x8xf32>
    %61 = tpu.concatenate %58, %60 in 1 : vector<8x8xf32>, vector<8x8xf32> -> vector<8x16xf32>
    %cst_54 = arith.constant dense<0.000000e+00> : vector<8x16xf32>
    %62 = tpu.matmul %4, %61, %cst_54 {dimension_numbers = #tpu.dot_dimension_numbers<[1], [0], [0], [1], [0, 0, 1, 1], [], []>} : vector<8x8xf32>, vector<8x16xf32>, vector<8x16xf32> -> vector<8x16xf32>
    %cst_55 = arith.constant dense<0.000000e+00> : vector<8x16xf32>
    %63 = tpu.matmul %62, %1, %cst_55 {dimension_numbers = #tpu.dot_dimension_numbers<[1], [0], [0], [1], [0, 0, 1, 1], [], []>} : vector<8x16xf32>, vector<16x16xf32>, vector<8x16xf32> -> vector<8x16xf32>
    %64 = arith.mulf %63, %9 : vector<8x16xf32>
    %65 = math.roundeven %64 : vector<8x16xf32>
    %66 = arith.subf %64, %65 : vector<8x16xf32>
    %67 = arith.mulf %66, %66 : vector<8x16xf32>
    %68 = arith.mulf %66, %67 : vector<8x16xf32>
    %69 = arith.addf %65, %68 : vector<8x16xf32>
    %70 = arith.mulf %69, %8 : vector<8x16xf32>
    %cst_56 = arith.constant dense<0.000000e+00> : vector<8x16xf32>
    %71 = tpu.matmul %5, %70, %cst_56 {dimension_numbers = #tpu.dot_dimension_numbers<[1], [0], [0], [1], [0, 0, 1, 1], [], []>} : vector<8x8xf32>, vector<8x16xf32>, vector<8x16xf32> -> vector<8x16xf32>
    %cst_57 = arith.constant dense<0.000000e+00> : vector<8x16xf32>
    %72 = tpu.matmul %71, %3, %cst_57 {dimension_numbers = #tpu.dot_dimension_numbers<[1], [0], [0], [1], [0, 0, 1, 1], [], []>} : vector<8x16xf32>, vector<16x16xf32>, vector<8x16xf32> -> vector<8x16xf32>
    %cst_58 = arith.constant dense<0.000000e+00> : vector<16x16xf32>
    %73 = tpu.matmul %12, %72, %cst_58 {dimension_numbers = #tpu.dot_dimension_numbers<[1], [0], [0], [1], [0, 0, 1, 1], [], []>} : vector<16x8xf32>, vector<8x16xf32>, vector<16x16xf32> -> vector<16x16xf32>
    %cst_59 = arith.constant dense<0.000000e+00> : vector<16x32xf32>
    %74 = tpu.matmul %73, %13, %cst_59 {dimension_numbers = #tpu.dot_dimension_numbers<[1], [0], [0], [1], [0, 0, 1, 1], [], []>} : vector<16x16xf32>, vector<16x32xf32>, vector<16x32xf32> -> vector<16x32xf32>
    %75 = vector.extract_strided_slice %74 {offsets = [0, 0], sizes = [16, 16], strides = [1, 1]} : vector<16x32xf32> to vector<16x16xf32>
    %76 = vector.extract_strided_slice %74 {offsets = [0, 16], sizes = [16, 16], strides = [1, 1]} : vector<16x32xf32> to vector<16x16xf32>
    %cst_60 = arith.constant 0.501960814 : f32
    %77 = vector.broadcast %cst_60 : f32 to vector<16x16xf32>
    %78 = arith.addf %56, %77 : vector<16x16xf32>
    %cst_61 = arith.constant 1.402000e+00 : f32
    %79 = vector.broadcast %cst_61 : f32 to vector<16x16xf32>
    %80 = arith.mulf %79, %76 : vector<16x16xf32>
    %81 = arith.addf %78, %80 : vector<16x16xf32>
    %cst_62 = arith.constant 3.441360e-01 : f32
    %82 = vector.broadcast %cst_62 : f32 to vector<16x16xf32>
    %83 = arith.mulf %82, %75 : vector<16x16xf32>
    %84 = arith.subf %78, %83 : vector<16x16xf32>
    %cst_63 = arith.constant 7.141360e-01 : f32
    %85 = vector.broadcast %cst_63 : f32 to vector<16x16xf32>
    %86 = arith.mulf %85, %76 : vector<16x16xf32>
    %87 = arith.subf %84, %86 : vector<16x16xf32>
    %cst_64 = arith.constant 1.772000e+00 : f32
    %88 = vector.broadcast %cst_64 : f32 to vector<16x16xf32>
    %89 = arith.mulf %88, %75 : vector<16x16xf32>
    %90 = arith.addf %78, %89 : vector<16x16xf32>
    %cst_65 = arith.constant 0.000000e+00 : f32
    %cst_66 = arith.constant 1.000000e+00 : f32
    %91 = vector.broadcast %cst_65 : f32 to vector<16x16xf32>
    %92 = arith.maximumf %91, %81 : vector<16x16xf32>
    %93 = vector.broadcast %cst_66 : f32 to vector<16x16xf32>
    %94 = arith.minimumf %93, %92 : vector<16x16xf32>
    %c0_67 = arith.constant 0 : index
    %c0_68 = arith.constant 0 : index
    %c0_69 = arith.constant 0 : index
    %c0_70 = arith.constant 0 : index
    %95 = vector.load %arg16[%c0_67, %c0_68, %c0_69, %c0_70] : memref<1x3x16x16xf32, #tpu.memory_space<vmem>>, vector<1x1x16x16xf32>
    %96 = vector.shape_cast %95 : vector<1x1x16x16xf32> to vector<16x16xf32>
    %97 = vector.shape_cast %94 : vector<16x16xf32> to vector<1x1x16x16xf32>
    tpu.vector_store %arg16[%c0_67, %c0_68, %c0_69, %c0_70], %97 {strides = array<i32>} : memref<1x3x16x16xf32, #tpu.memory_space<vmem>>, vector<1x1x16x16xf32>,
    %cst_71 = arith.constant 0.000000e+00 : f32
    %cst_72 = arith.constant 1.000000e+00 : f32
    %98 = vector.broadcast %cst_71 : f32 to vector<16x16xf32>
    %99 = arith.maximumf %98, %87 : vector<16x16xf32>
    %100 = vector.broadcast %cst_72 : f32 to vector<16x16xf32>
    %101 = arith.minimumf %100, %99 : vector<16x16xf32>
    %c0_73 = arith.constant 0 : index
    %c1_74 = arith.constant 1 : index
    %c0_75 = arith.constant 0 : index
    %c0_76 = arith.constant 0 : index
    %102 = vector.load %arg16[%c0_73, %c1_74, %c0_75, %c0_76] : memref<1x3x16x16xf32, #tpu.memory_space<vmem>>, vector<1x1x16x16xf32>
    %103 = vector.shape_cast %102 : vector<1x1x16x16xf32> to vector<16x16xf32>
    %104 = vector.shape_cast %101 : vector<16x16xf32> to vector<1x1x16x16xf32>
    tpu.vector_store %arg16[%c0_73, %c1_74, %c0_75, %c0_76], %104 {strides = array<i32>} : memref<1x3x16x16xf32, #tpu.memory_space<vmem>>, vector<1x1x16x16xf32>,
    %cst_77 = arith.constant 0.000000e+00 : f32
    %cst_78 = arith.constant 1.000000e+00 : f32
    %105 = vector.broadcast %cst_77 : f32 to vector<16x16xf32>
    %106 = arith.maximumf %105, %90 : vector<16x16xf32>
    %107 = vector.broadcast %cst_78 : f32 to vector<16x16xf32>
    %108 = arith.minimumf %107, %106 : vector<16x16xf32>
    %c0_79 = arith.constant 0 : index
    %c2_80 = arith.constant 2 : index
    %c0_81 = arith.constant 0 : index
    %c0_82 = arith.constant 0 : index
    %109 = vector.load %arg16[%c0_79, %c2_80, %c0_81, %c0_82] : memref<1x3x16x16xf32, #tpu.memory_space<vmem>>, vector<1x1x16x16xf32>
    %110 = vector.shape_cast %109 : vector<1x1x16x16xf32> to vector<16x16xf32>
    %111 = vector.shape_cast %108 : vector<16x16xf32> to vector<1x1x16x16xf32>
    tpu.vector_store %arg16[%c0_79, %c2_80, %c0_81, %c0_82], %111 {strides = array<i32>} : memref<1x3x16x16xf32, #tpu.memory_space<vmem>>, vector<1x1x16x16xf32>,
    return
  }
  func.func @transform_0(%arg0: i32) -> (i32, i32, i32, i32) {
    %c0_i32 = arith.constant 0 : i32
    %c0_i32_0 = arith.constant 0 : i32
    %c0_i32_1 = arith.constant 0 : i32
    %c0_i32_2 = arith.constant 0 : i32
    return %arg0, %c0_i32, %c0_i32_0, %c0_i32_1 : i32, i32, i32, i32
  }
  func.func @transform_1(%arg0: i32) -> (i32, i32) {
    %c0_i32 = arith.constant 0 : i32
    %c0_i32_0 = arith.constant 0 : i32
    %c0_i32_1 = arith.constant 0 : i32
    return %c0_i32, %c0_i32_0 : i32, i32
  }
  func.func @transform_2(%arg0: i32) -> (i32, i32) {
    %c0_i32 = arith.constant 0 : i32
    %c0_i32_0 = arith.constant 0 : i32
    %c0_i32_1 = arith.constant 0 : i32
    return %c0_i32, %c0_i32_0 : i32, i32
  }
  func.func @transform_3(%arg0: i32) -> (i32, i32) {
    %c0_i32 = arith.constant 0 : i32
    %c0_i32_0 = arith.constant 0 : i32
    %c0_i32_1 = arith.constant 0 : i32
    return %c0_i32, %c0_i32_0 : i32, i32
  }
  func.func @transform_4(%arg0: i32) -> (i32, i32) {
    %c0_i32 = arith.constant 0 : i32
    %c0_i32_0 = arith.constant 0 : i32
    %c0_i32_1 = arith.constant 0 : i32
    return %c0_i32, %c0_i32_0 : i32, i32
  }
  func.func @transform_5(%arg0: i32) -> (i32, i32) {
    %c0_i32 = arith.constant 0 : i32
    %c0_i32_0 = arith.constant 0 : i32
    %c0_i32_1 = arith.constant 0 : i32
    return %c0_i32, %c0_i32_0 : i32, i32
  }
  func.func @transform_6(%arg0: i32) -> (i32, i32) {
    %c0_i32 = arith.constant 0 : i32
    %c0_i32_0 = arith.constant 0 : i32
    %c0_i32_1 = arith.constant 0 : i32
    return %c0_i32, %c0_i32_0 : i32, i32
  }
  func.func @transform_7(%arg0: i32) -> (i32, i32) {
    %c0_i32 = arith.constant 0 : i32
    %c0_i32_0 = arith.constant 0 : i32
    %c0_i32_1 = arith.constant 0 : i32
    return %c0_i32, %c0_i32_0 : i32, i32
  }
  func.func @transform_8(%arg0: i32) -> (i32, i32) {
    %c0_i32 = arith.constant 0 : i32
    %c0_i32_0 = arith.constant 0 : i32
    %c0_i32_1 = arith.constant 0 : i32
    return %c0_i32, %c0_i32_0 : i32, i32
  }
  func.func @transform_9(%arg0: i32) -> (i32, i32) {
    %c0_i32 = arith.constant 0 : i32
    %c0_i32_0 = arith.constant 0 : i32
    %c0_i32_1 = arith.constant 0 : i32
    return %c0_i32, %c0_i32_0 : i32, i32
  }
  func.func @transform_10(%arg0: i32) -> (i32, i32) {
    %c0_i32 = arith.constant 0 : i32
    %c0_i32_0 = arith.constant 0 : i32
    %c0_i32_1 = arith.constant 0 : i32
    return %c0_i32, %c0_i32_0 : i32, i32
  }
  func.func @transform_11(%arg0: i32) -> (i32, i32) {
    %c0_i32 = arith.constant 0 : i32
    %c0_i32_0 = arith.constant 0 : i32
    %c0_i32_1 = arith.constant 0 : i32
    return %c0_i32, %c0_i32_0 : i32, i32
  }
  func.func @transform_12(%arg0: i32) -> (i32, i32) {
    %c0_i32 = arith.constant 0 : i32
    %c0_i32_0 = arith.constant 0 : i32
    %c0_i32_1 = arith.constant 0 : i32
    return %c0_i32, %c0_i32_0 : i32, i32
  }
  func.func @transform_13(%arg0: i32) -> (i32, i32) {
    %c0_i32 = arith.constant 0 : i32
    %c0_i32_0 = arith.constant 0 : i32
    %c0_i32_1 = arith.constant 0 : i32
    return %c0_i32, %c0_i32_0 : i32, i32
  }
  func.func @transform_14(%arg0: i32) -> (i32, i32) {
    %c0_i32 = arith.constant 0 : i32
    %c0_i32_0 = arith.constant 0 : i32
    %c0_i32_1 = arith.constant 0 : i32
    return %c0_i32, %c0_i32_0 : i32, i32
  }
  func.func @transform_15(%arg0: i32) -> (i32, i32, i32, i32) {
    %c0_i32 = arith.constant 0 : i32
    %c0_i32_0 = arith.constant 0 : i32
    %c0_i32_1 = arith.constant 0 : i32
    %c0_i32_2 = arith.constant 0 : i32
    return %arg0, %c0_i32, %c0_i32_0, %c0_i32_1 : i32, i32, i32, i32
  }
}

</mosaic_0001>

<bundles_post_ra>
// kernel: diff_jpeg_forward.1
= control target key start
LH: loop header
LB: loop body
LE: loop exit
PB: predicated region body
PF: predicated region fallthrough
CT: control target
= control target key end

     0   :  { %s3534_s0 = inlined_call_operand.hbm [shape: f32[2,3,16,16], index: 0, kind: input, shape index: {}]   ;;  %s3535_s1 = inlined_call_operand.hbm [shape: f32[16,16], index: 1, kind: input, shape index: {}, may-alias: {1,4}]   ;;  %s3536_s2 = inlined_call_operand.hbm [shape: f32[16,16], index: 2, kind: input, shape index: {}]   ;;  %s3537_s3 = inlined_call_operand.hbm [shape: f32[16,16], index: 3, kind: input, shape index: {}]   ;;  %s3538_s4 = inlined_call_operand.hbm [shape: f32[16,16], index: 4, kind: input, shape index: {}, may-alias: {1,4}]   ;;  %s3539_s5 = inlined_call_operand.hbm [shape: f32[8,8], index: 5, kind: input, shape index: {}]   ;;  %s3540_s6 = inlined_call_operand.hbm [shape: f32[8,8], index: 6, kind: input, shape index: {}]   ;;  %s3541_s7 = inlined_call_operand.hbm [shape: f32[16,16], index: 7, kind: input, shape index: {}]   ;;  %s3542_s8 = inlined_call_operand.hbm [shape: f32[16,16], index: 8, kind: input, shape index: {}]   ;;  %s3543_s9 = inlined_call_operand.hbm [shape: f32[8,16], index: 9, kind: input, shape index: {}]   ;;  %s3544_s10 = inlined_call_operand.hbm [shape: f32[8,16], index: 10, kind: input, shape index: {}]   ;;  %s3545_s11 = inlined_call_operand.hbm [shape: f32[8,16], index: 11, kind: input, shape index: {}]   ;;  %s3546_s12 = inlined_call_operand.vmem [shape: f32[16,8], index: 12, kind: input, shape index: {}, may-alias: {12,13}]   ;;  %s3547_s13 = inlined_call_operand.vmem [shape: f32[16,8], index: 13, kind: input, shape index: {}, may-alias: {12,13}]   ;;  %s3548_s14 = inlined_call_operand.vmem [shape: f32[16,32], index: 14, kind: input, shape index: {}]   ;;  %s3549_s15 = inlined_call_operand.hbm [shape: f32[2,3,16,16], index: 15, kind: output, shape index: {}]  }
   0x1   :  { %3567 = sst [smem:[#allocation33_spill]] %s3534_s0 }
   0x2   :  { %3568 = sst [smem:[#allocation34_spill]] %s3535_s1 }
   0x3   :  { %3569 = sst [smem:[#allocation35_spill]] %s3536_s2 }
   0x4   :  { %3570 = sst [smem:[#allocation36_spill]] %s3537_s3 }
   0x5   :  { %3571 = sst [smem:[#allocation37_spill]] %s3538_s4 }
   0x6   :  { %3572 = sst [smem:[#allocation38_spill]] %s3539_s5 }
   0x7   :  { %3573 = sst [smem:[#allocation39_spill]] %s3546_s12 }
   0x8   :  { %3574 = sst [smem:[#allocation40_spill]] %s3547_s13 }
   0x9   :  { %3575 = sst [smem:[#allocation41_spill]] %s3548_s14 }
   0xa   :  { %3576 = sst [smem:[#allocation42_spill]] %s3549_s15 }
   0xb   :  { %20 = vsyncpa [#allocation3], 0 }
   0xc   :  { %22 = vsyncpa [#allocation3 + $0x1], 0 }
   0xd   :  { %23 = vsyncpa [#allocation6], 0 }
   0xe   :  { %24 = vsyncpa [#allocation9], 0 }
   0xf   :  { %25 = vsyncpa [#allocation12], 0 }
  0x10   :  { %26 = vsyncpa [#allocation15], 0 }
  0x11   :  { %27 = vsyncpa [#allocation18], 0 }
  0x12   :  { %28 = vsyncpa [#allocation21], 0 }
  0x13   :  { %29 = vsyncpa [#allocation4], 0 }
  0x14   :  { %31 = vsyncpa [#allocation4 + $0x1], 0  ;;  %s3003_s18 = smov 0   ;;  %s3005_s19 = smov 0  }
  0x15   :  { %s3007_s20 = smov 0   ;;  %s3009_s21 = smov 0  }
  0x16 LB: > { %s2902_s22 = smov [#allocation5]   ;;  %s3024_s24 = sadd.s32 4294967295, %s2900_s21   ;;  %s2900_s21 = sphi %s3009_s21, %s3622_s21   ;;  %s2896_s20 = sphi %s3007_s20, %s3621_s20   ;;  %s2892_s19 = sphi %s3005_s19, %s3620_s19   ;;  %s2888_s18 = sphi %s3003_s18, %s3619_s18  }
  0x17   : > { %s400_s23 = sshll.u32 %s2902_s22, 4  ;;  %3577 = sst [smem:[#allocation31_spill]] %s3024_s24  ;;  %s3029_s23 = int_to_ptr.vmem [resolvable:$true] %s400_s23 }
  0x18   : > { %p2066_p0 = scmp.ge.s32.totalorder %s2900_s21, 1  ;;  %p3561_p1 = scmp.eq.s32.totalorder %s3024_s24, 0 }
  0x19   : > { %p388_p2 = scmp.lt.s32.totalorder %s2900_s21, 3  ;;  %s2903_s26 = smov [#allocation8]  }
  0x1a   : > { %s426_s27 = sshll.u32 %s2903_s26, 4  ;;  %s2904_s29 = smov [#allocation11]   ;;  %s3044_s27 = int_to_ptr.vmem [resolvable:$true] %s426_s27 }
  0x1b   : > { %p3031_p3 = pnand %p2066_p0, %p388_p2  ;;  %s453_s30 = sshll.u32 %s2904_s29, 4  ;;  %s3046_s30 = int_to_ptr.vmem [resolvable:$true] %s453_s30 }
  0x1c   : > { %s3581_s1 = sld [smem:[#allocation34_spill]] }
  0x1d   : > { %s3578_s25 = scalar_select %p3031_p3, 1, 0 }
  0x1e   : > { %p2355_p5 = pneg %p3031_p3 }
  0x1f   : > { %3579 = sst [smem:[#allocation32_spill]] %s3578_s25 }
  0x20   : > { %p3040_p6 = pnand %p2355_p5, %p3561_p1 }
  0x22   : > { %s2472_s22 = scalar_lea.hbm %s3581_s1, 256  ;;  %p3056_p8 = pneg %p3040_p6 }
  0x23   : > { %p2473_p7 = scmp.ne.s32.totalorder %s3581_s1, %s2472_s22  ;;  %p2479_p11 = scmp.lt.u32.totalorder %s2472_s22, %s3581_s1 }
  0x25   : > { %p2475_p9 = pnand %p3056_p8, %p2473_p7 }
  0x27   : > { %p2476_p10 = pneg %p2475_p9 }
  0x29   : > { %p2481_p12 = pnand %p2479_p11, %p2476_p10 }
  0x2b   : > { %2484 = shalt.err (!%p2481_p12)
}
  0x2c   : > { %s2485_s14 = scalar_lea.vmem %s3029_s23, 256  ;;  %p2493_p5 = scmp.lt.s32.totalorder %s3029_s23, %s3029_s23 }
  0x2d   : > { %p2486_p13 = scmp.ne.s32.totalorder %s3029_s23, %s2485_s14  ;;  %p2494_p4 = scmp.lt.s32.totalorder %s2485_s14, %s2485_s14 }
  0x2f   : > { %p2488_p0 = pnand %p2486_p13, %p3056_p8  ;;  %p2495_p7 = por %p2494_p4, %p2493_p5 }
  0x31   : > { %p2489_p2 = pneg %p2488_p0 }
  0x33   : > { %p2496_p9 = pnand %p2495_p7, %p2489_p2 }
  0x35   : > { %2499 = shalt.err (!%p2496_p9)
}
  0x36   : > { %s3559_s15 = smov 128   ;;  %s3563_s13 = smov 8  }
  0x37   : > { %2358 = dma.hbm_to_vmem [thread:$0]  (!%p3040_p6), %s3581_s1, 256, %s3029_s23, [#allocation6], %s3559_s15, %s3559_s15, %s3563_s13  }
  0x38   : > { %s3583_s3 = sld [smem:[#allocation36_spill]] }
  0x3e   : > { %s2500_s14 = scalar_lea.hbm %s3583_s3, 256 }
  0x3f   : > { %p2501_p4 = scmp.ne.s32.totalorder %s3583_s3, %s2500_s14  ;;  %p2507_p12 = scmp.lt.u32.totalorder %s2500_s14, %s3583_s3 }
  0x41   : > { %p2503_p10 = pnand %p2501_p4, %p3056_p8 }
  0x43   : > { %p2504_p11 = pneg %p2503_p10 }
  0x45   : > { %p2509_p13 = pnand %p2507_p12, %p2504_p11 }
  0x47   : > { %2512 = shalt.err (!%p2509_p13)
}
  0x48   : > { %s2513_s23 = scalar_lea.vmem %s3044_s27, 256  ;;  %p2521_p7 = scmp.lt.s32.totalorder %s3044_s27, %s3044_s27 }
  0x49   : > { %p2514_p0 = scmp.ne.s32.totalorder %s3044_s27, %s2513_s23  ;;  %p2522_p9 = scmp.lt.s32.totalorder %s2513_s23, %s2513_s23 }
  0x4b   : > { %p2516_p2 = pnand %p2514_p0, %p3056_p8  ;;  %p2523_p4 = por %p2522_p9, %p2521_p7 }
  0x4d   : > { %p2517_p5 = pneg %p2516_p2 }
  0x4f   : > { %p2524_p10 = pnand %p2523_p4, %p2517_p5 }
  0x51   : > { %2527 = shalt.err (!%p2524_p10)
}
  0x52   : > { %2364 = dma.hbm_to_vmem [thread:$0]  (!%p3040_p6), %s3583_s3, 256, %s3044_s27, [#allocation9], %s3559_s15, %s3559_s15, %s3563_s13  }
  0x53   : > { %s3584_s5 = sld [smem:[#allocation38_spill]] }
  0x59   : > { %s2528_s16 = scalar_lea.hbm %s3584_s5, 128 }
  0x5a   : > { %p2529_p11 = scmp.ne.s32.totalorder %s3584_s5, %s2528_s16  ;;  %p2535_p0 = scmp.lt.u32.totalorder %s2528_s16, %s3584_s5 }
  0x5c   : > { %p2531_p12 = pnand %p2529_p11, %p3056_p8 }
  0x5e   : > { %p2532_p13 = pneg %p2531_p12 }
  0x60   : > { %p2537_p2 = pnand %p2535_p0, %p2532_p13 }
  0x62   : > { %2540 = shalt.err (!%p2537_p2)
}
  0x63   : > { %s2541_s27 = scalar_lea.vmem %s3046_s30, 128  ;;  %p2549_p4 = scmp.lt.s32.totalorder %s3046_s30, %s3046_s30 }
  0x64   : > { %p2542_p5 = scmp.ne.s32.totalorder %s3046_s30, %s2541_s27  ;;  %p2550_p10 = scmp.lt.s32.totalorder %s2541_s27, %s2541_s27 }
  0x66   : > { %p2544_p7 = pnand %p2542_p5, %p3056_p8  ;;  %p2551_p11 = por %p2550_p10, %p2549_p4 }
  0x68   : > { %p2545_p9 = pneg %p2544_p7 }
  0x6a   : > { %p2552_p12 = pnand %p2551_p11, %p2545_p9 }
  0x6c   : > { %2555 = shalt.err (!%p2552_p12)
}
  0x6d   : > { %2370 = dma.hbm_to_vmem [thread:$0]  (!%p3040_p6), %s3584_s5, 128, %s3046_s30, [#allocation12]  }
  0x6e   : > { %s2907_s12 = smov [#allocation14]   ;;  %s2908_s25 = smov [#allocation17]  }
  0x6f   : > { %s474_s24 = sshll.u32 %s2907_s12, 4  ;;  %s501_s16 = sshll.u32 %s2908_s25, 4  ;;  %s475_s24 = int_to_ptr.vmem [resolvable:$true] %s474_s24  ;;  %s502_s16 = int_to_ptr.vmem [resolvable:$true] %s501_s16 }
  0x70   : > { %s2556_s29 = scalar_lea.hbm %s3541_s7, 256 }
  0x71   : > { %p2557_p13 = scmp.ne.s32.totalorder %s3541_s7, %s2556_s29  ;;  %p2563_p5 = scmp.lt.u32.totalorder %s2556_s29, %s3541_s7 }
  0x73   : > { %p2559_p0 = pnand %p2557_p13, %p3056_p8 }
  0x75   : > { %p2560_p2 = pneg %p2559_p0 }
  0x77   : > { %p2565_p7 = pnand %p2563_p5, %p2560_p2 }
  0x79   : > { %2568 = shalt.err (!%p2565_p7)
}
  0x7a   : > { %s2569_s30 = scalar_lea.vmem %s475_s24, 256  ;;  %p2577_p11 = scmp.lt.s32.totalorder %s475_s24, %s475_s24 }
  0x7b   : > { %p2570_p9 = scmp.ne.s32.totalorder %s475_s24, %s2569_s30  ;;  %p2578_p12 = scmp.lt.s32.totalorder %s2569_s30, %s2569_s30 }
  0x7d   : > { %p2572_p4 = pnand %p2570_p9, %p3056_p8  ;;  %p2579_p1 = por %p2578_p12, %p2577_p11 }
  0x7f   : > { %p2573_p10 = pneg %p2572_p4 }
  0x81   : > { %p2580_p3 = pnand %p2579_p1, %p2573_p10 }
  0x83   : > { %2583 = shalt.err (!%p2580_p3)
}
  0x84   : > { %s3585_s0 = smov 128   ;;  %s2584_s22 = scalar_lea.hbm %s3543_s9, 128 }
  0x85   : > { %2376 = dma.hbm_to_vmem [thread:$0]  (!%p3040_p6), %s3541_s7, 256, %s475_s24, [#allocation15], %s3585_s0, %s3585_s0, %s3563_s13  }
  0x86   : > { %p2585_p1 = scmp.ne.s32.totalorder %s3543_s9, %s2584_s22  ;;  %p2591_p0 = scmp.lt.u32.totalorder %s2584_s22, %s3543_s9 }
  0x88   : > { %p2587_p3 = pnand %p2585_p1, %p3056_p8 }
  0x8a   : > { %p2588_p13 = pneg %p2587_p3 }
  0x8c   : > { %p2593_p2 = pnand %p2591_p0, %p2588_p13 }
  0x8e   : > { %2596 = shalt.err (!%p2593_p2)
}
  0x8f   : > { %s2597_s30 = scalar_lea.vmem %s502_s16, 128  ;;  %p2605_p4 = scmp.lt.s32.totalorder %s502_s16, %s502_s16 }
  0x90   : > { %p2598_p5 = scmp.ne.s32.totalorder %s502_s16, %s2597_s30  ;;  %p2606_p10 = scmp.lt.s32.totalorder %s2597_s30, %s2597_s30 }
  0x92   : > { %p2600_p7 = pnand %p2598_p5, %p3056_p8  ;;  %p2607_p11 = por %p2606_p10, %p2605_p4 }
  0x94   : > { %p2601_p9 = pneg %p2600_p7 }
  0x96   : > { %p2608_p12 = pnand %p2607_p11, %p2601_p9 }
  0x98   : > { %2611 = shalt.err (!%p2608_p12)
}
  0x99   : > { %2382 = dma.hbm_to_vmem [thread:$0]  (!%p3040_p6), %s3543_s9, 128, %s502_s16, [#allocation18]  }
  0x9a   : > { %s2909_s12 = smov [#allocation7]   ;;  %s2910_s17 = smov [#allocation10]  }
  0x9b   : > { %s413_s25 = sshll.u32 %s2909_s12, 4  ;;  %s439_s22 = sshll.u32 %s2910_s17, 4  ;;  %s414_s25 = int_to_ptr.vmem [resolvable:$true] %s413_s25  ;;  %s440_s22 = int_to_ptr.vmem [resolvable:$true] %s439_s22 }
  0x9c   : > { %s3586_s2 = sld [smem:[#allocation35_spill]] }
  0xa2   : > { %s2612_s27 = scalar_lea.hbm %s3586_s2, 256 }
  0xa3   : > { %p2613_p1 = scmp.ne.s32.totalorder %s3586_s2, %s2612_s27  ;;  %p2619_p0 = scmp.lt.u32.totalorder %s2612_s27, %s3586_s2 }
  0xa5   : > { %p2615_p3 = pnand %p2613_p1, %p3056_p8 }
  0xa7   : > { %p2616_p13 = pneg %p2615_p3 }
  0xa9   : > { %p2621_p2 = pnand %p2619_p0, %p2616_p13 }
  0xab   : > { %2624 = shalt.err (!%p2621_p2)
}
  0xac   : > { %s2625_s16 = scalar_lea.vmem %s414_s25, 256  ;;  %p2633_p4 = scmp.lt.s32.totalorder %s414_s25, %s414_s25 }
  0xad   : > { %p2626_p5 = scmp.ne.s32.totalorder %s414_s25, %s2625_s16  ;;  %p2634_p10 = scmp.lt.s32.totalorder %s2625_s16, %s2625_s16 }
  0xaf   : > { %p2628_p7 = pnand %p2626_p5, %p3056_p8  ;;  %p2635_p11 = por %p2634_p10, %p2633_p4 }
  0xb1   : > { %p2629_p9 = pneg %p2628_p7 }
  0xb3   : > { %p2636_p12 = pnand %p2635_p11, %p2629_p9 }
  0xb5   : > { %2639 = shalt.err (!%p2636_p12)
}
  0xb6   : > { %s3587_s15 = smov 8   ;;  %s3588_s4 = sld [smem:[#allocation37_spill]] }
  0xb7   : > { %2361 = dma.hbm_to_vmem [thread:$0]  (!%p3040_p6), %s3586_s2, 256, %s414_s25, [#allocation6], %s3585_s0, %s3585_s0, %s3587_s15  }
  0xbc   : > { %s2640_s14 = scalar_lea.hbm %s3588_s4, 256 }
  0xbd   : > { %p2641_p1 = scmp.ne.s32.totalorder %s3588_s4, %s2640_s14  ;;  %p2647_p0 = scmp.lt.u32.totalorder %s2640_s14, %s3588_s4 }
  0xbf   : > { %p2643_p3 = pnand %p2641_p1, %p3056_p8 }
  0xc1   : > { %p2644_p13 = pneg %p2643_p3 }
  0xc3   : > { %p2649_p2 = pnand %p2647_p0, %p2644_p13 }
  0xc5   : > { %2652 = shalt.err (!%p2649_p2)
}
  0xc6   : > { %s2653_s16 = scalar_lea.vmem %s440_s22, 256  ;;  %p2661_p4 = scmp.lt.s32.totalorder %s440_s22, %s440_s22 }
  0xc7   : > { %p2654_p5 = scmp.ne.s32.totalorder %s440_s22, %s2653_s16  ;;  %p2662_p10 = scmp.lt.s32.totalorder %s2653_s16, %s2653_s16 }
  0xc9   : > { %p2656_p7 = pnand %p2654_p5, %p3056_p8  ;;  %p2663_p11 = por %p2662_p10, %p2661_p4 }
  0xcb   : > { %p2657_p9 = pneg %p2656_p7 }
  0xcd   : > { %p2664_p12 = pnand %p2663_p11, %p2657_p9 }
  0xcf   : > { %2667 = shalt.err (!%p2664_p12)
}
  0xd0   : > { %2367 = dma.hbm_to_vmem [thread:$0]  (!%p3040_p6), %s3588_s4, 256, %s440_s22, [#allocation9], %s3585_s0, %s3585_s0, %s3587_s15  }
  0xd1   : > { %s2911_s12 = smov [#allocation13]   ;;  %s2912_s29 = smov [#allocation16]  }
  0xd2   : > { %s464_s17 = sshll.u32 %s2911_s12, 4  ;;  %s487_s14 = sshll.u32 %s2912_s29, 4  ;;  %s465_s17 = int_to_ptr.vmem [resolvable:$true] %s464_s17  ;;  %s488_s14 = int_to_ptr.vmem [resolvable:$true] %s487_s14 }
  0xd3   : > { %s2668_s30 = scalar_lea.hbm %s3540_s6, 128 }
  0xd4   : > { %p2669_p1 = scmp.ne.s32.totalorder %s3540_s6, %s2668_s30  ;;  %p2675_p0 = scmp.lt.u32.totalorder %s2668_s30, %s3540_s6 }
  0xd6   : > { %p2671_p3 = pnand %p2669_p1, %p3056_p8 }
  0xd8   : > { %p2672_p13 = pneg %p2671_p3 }
  0xda   : > { %p2677_p2 = pnand %p2675_p0, %p2672_p13 }
  0xdc   : > { %2680 = shalt.err (!%p2677_p2)
}
  0xdd   : > { %s2681_s22 = scalar_lea.vmem %s465_s17, 128  ;;  %p2689_p4 = scmp.lt.s32.totalorder %s465_s17, %s465_s17 }
  0xde   : > { %p2682_p5 = scmp.ne.s32.totalorder %s465_s17, %s2681_s22  ;;  %p2690_p10 = scmp.lt.s32.totalorder %s2681_s22, %s2681_s22 }
  0xe0   : > { %p2684_p7 = pnand %p2682_p5, %p3056_p8  ;;  %p2691_p11 = por %p2690_p10, %p2689_p4 }
  0xe2   : > { %p2685_p9 = pneg %p2684_p7 }
  0xe4   : > { %p2692_p12 = pnand %p2691_p11, %p2685_p9 }
  0xe6   : > { %2695 = shalt.err (!%p2692_p12)
}
  0xe7   : > { %2373 = dma.hbm_to_vmem [thread:$0]  (!%p3040_p6), %s3540_s6, 128, %s465_s17, [#allocation12]  }
  0xe8   : > { %s2696_s27 = scalar_lea.hbm %s3542_s8, 256 }
  0xe9   : > { %p2697_p1 = scmp.ne.s32.totalorder %s3542_s8, %s2696_s27  ;;  %p2703_p0 = scmp.lt.u32.totalorder %s2696_s27, %s3542_s8 }
  0xeb   : > { %p2699_p3 = pnand %p2697_p1, %p3056_p8 }
  0xed   : > { %p2700_p13 = pneg %p2699_p3 }
  0xef   : > { %p2705_p2 = pnand %p2703_p0, %p2700_p13 }
  0xf1   : > { %2708 = shalt.err (!%p2705_p2)
}
  0xf2   : > { %s2709_s25 = scalar_lea.vmem %s488_s14, 256  ;;  %p2717_p4 = scmp.lt.s32.totalorder %s488_s14, %s488_s14 }
  0xf3   : > { %p2710_p5 = scmp.ne.s32.totalorder %s488_s14, %s2709_s25  ;;  %p2718_p10 = scmp.lt.s32.totalorder %s2709_s25, %s2709_s25 }
  0xf5   : > { %p2712_p7 = pnand %p2710_p5, %p3056_p8  ;;  %p2719_p11 = por %p2718_p10, %p2717_p4 }
  0xf7   : > { %p2713_p9 = pneg %p2712_p7 }
  0xf9   : > { %p2720_p12 = pnand %p2719_p11, %p2713_p9 }
  0xfb   : > { %2723 = shalt.err (!%p2720_p12)
}
  0xfc   : > { %2379 = dma.hbm_to_vmem [thread:$0]  (!%p3040_p6), %s3542_s8, 256, %s488_s14, [#allocation15], %s3585_s0, %s3585_s0, %s3587_s15  }
  0xfd   : > { %s2913_s13 = smov [#allocation19]   ;;  %s2914_s1 = smov [#allocation20]  }
  0xfe   : > { %s512_s12 = sshll.u32 %s2913_s13, 4  ;;  %s523_s29 = sshll.u32 %s2914_s1, 4  ;;  %s513_s12 = int_to_ptr.vmem [resolvable:$true] %s512_s12  ;;  %s524_s29 = int_to_ptr.vmem [resolvable:$true] %s523_s29 }
  0xff   : > { %s2724_s30 = scalar_lea.hbm %s3544_s10, 128 }
 0x100   : > { %p2725_p1 = scmp.ne.s32.totalorder %s3544_s10, %s2724_s30  ;;  %p2731_p0 = scmp.lt.u32.totalorder %s2724_s30, %s3544_s10 }
 0x102   : > { %p2727_p3 = pnand %p2725_p1, %p3056_p8 }
 0x104   : > { %p2728_p13 = pneg %p2727_p3 }
 0x106   : > { %p2733_p2 = pnand %p2731_p0, %p2728_p13 }
 0x108   : > { %2736 = shalt.err (!%p2733_p2)
}
 0x109   : > { %s2737_s14 = scalar_lea.vmem %s513_s12, 128  ;;  %p2745_p4 = scmp.lt.s32.totalorder %s513_s12, %s513_s12 }
 0x10a   : > { %p2738_p5 = scmp.ne.s32.totalorder %s513_s12, %s2737_s14  ;;  %p2746_p10 = scmp.lt.s32.totalorder %s2737_s14, %s2737_s14 }
 0x10c   : > { %p2740_p7 = pnand %p2738_p5, %p3056_p8  ;;  %p2747_p11 = por %p2746_p10, %p2745_p4 }
 0x10e   : > { %p2741_p9 = pneg %p2740_p7 }
 0x110   : > { %p2748_p12 = pnand %p2747_p11, %p2741_p9 }
 0x112   : > { %2751 = shalt.err (!%p2748_p12)
}
 0x113   : > { %2385 = dma.hbm_to_vmem [thread:$0]  (!%p3040_p6), %s3544_s10, 128, %s513_s12, [#allocation18]  }
 0x114   : > { %s2752_s23 = scalar_lea.hbm %s3545_s11, 128 }
 0x115   : > { %p2753_p1 = scmp.ne.s32.totalorder %s3545_s11, %s2752_s23  ;;  %p2759_p0 = scmp.lt.u32.totalorder %s2752_s23, %s3545_s11 }
 0x117   : > { %p2755_p3 = pnand %p2753_p1, %p3056_p8 }
 0x119   : > { %p2756_p13 = pneg %p2755_p3 }
 0x11b   : > { %p2761_p2 = pnand %p2759_p0, %p2756_p13 }
 0x11d   : > { %2764 = shalt.err (!%p2761_p2)
}
 0x11e   : > { %s2765_s17 = scalar_lea.vmem %s524_s29, 128  ;;  %p2773_p4 = scmp.lt.s32.totalorder %s524_s29, %s524_s29 }
 0x11f   : > { %p2766_p5 = scmp.ne.s32.totalorder %s524_s29, %s2765_s17  ;;  %p2774_p10 = scmp.lt.s32.totalorder %s2765_s17, %s2765_s17 }
 0x121   : > { %p2768_p7 = pnand %p2766_p5, %p3056_p8  ;;  %p2775_p11 = por %p2774_p10, %p2773_p4 }
 0x123   : > { %p2769_p9 = pneg %p2768_p7 }
 0x125   : > { %p2776_p12 = pnand %p2775_p11, %p2769_p9 }
 0x127   : > { %2779 = shalt.err (!%p2776_p12)
}
 0x128   : > { %s3589_s26 = sld [smem:[#allocation31_spill]]  ;;  %s2065_s22 = sadd.s32 4294967294, %s2900_s21  }
 0x129   : > { %2388 = dma.hbm_to_vmem [thread:$0]  (!%p3040_p6), %s3545_s11, 128, %s524_s29, [#allocation21]  }
 0x12a   : > { %s3287_s28 = sadd.s32 1, %s2900_s21   ;;  %s44_s13 = sadd.s32 1, %s2896_s20 }
 0x12b   : > { %s41_s1 = ssub.s32 %s2900_s21, %s3287_s28  ;;  %p51_p8 = scmp.ne.s32.totalorder %s2896_s20, %s2892_s19 }
 0x12c   : > { %p42_p1 = scmp.eq.s32.totalorder %s41_s1, 0  ;;  %p52_p3 = scmp.eq.s32.totalorder %s2900_s21, 0 }
 0x12d   : > { %p57_p13 = scmp.ne.s32.totalorder %s2892_s19, %s2888_s18  ;;  %p381_p9 = scmp.eq.s32.totalorder %s2065_s22, 1 }
 0x12e   : > { %p375_p0 = scmp.eq.s32.totalorder %s3589_s26, 1  ;;  %p53_p2 = por %p52_p3, %p51_p8 }
 0x12f   : > { %s3299_s27 = scalar_select %p42_p1, %s2896_s20, %s44_s13  }
 0x130   : > { %p3590_p5 = scmp.eq.s32.totalorder %s3589_s26, 0  ;;  %p3307_p6 = por %p375_p0, %p51_p8 }
 0x131   : > { %p2408_p4 = scmp.lt.s32.totalorder %s2900_s21, 2  ;;  %s543_s30 = sand.u32 1, %s2896_s20  }
 0x132   : > { %p3303_p7 = por %p3590_p5, %p57_p13  ;;  %p3313_p10 = por %p381_p9, %p57_p13 }
 0x133   : > { %s3592_s29 = scalar_select %p3307_p6, 1, 0 }
 0x134   : > { %s3593_s24 = scalar_select %p3313_p10, 1, 0 }
 0x135   : > { %s2300_s16 = smul.u32 48, %s543_s30  ;;  %p3317_p11 = pnand %p2408_p4, %p53_p2 }
 0x136   : > { %s2301_s17 = smul.u32 768, %s2900_s21  ;;  %s3595_s26 = sld [smem:[#allocation33_spill]] }
 0x137   : > { %s547_s22 = scalar_lea.vmem [#allocation2], %s2300_s16  ;;  %s3329_s2 = scalar_lea.sflag [#allocation3], %s543_s30 }
 0x138   : > { %s554_s1 = sshll.u32 %s547_s22, 4  ;;  %p2782_p8 = pneg %p3317_p11  ;;  %s3327_s1 = int_to_ptr.vmem [resolvable:$true] %s554_s1 }
 0x13c   : > { %s3325_s13 = scalar_lea.hbm %s3595_s26, %s2301_s17  ;;  %s2785_s14 = scalar_lea.hbm %s3595_s26, 1536 }
 0x13d   : > { %s2780_s3 = scalar_lea.hbm %s3325_s13, 768  ;;  %p2786_p13 = scmp.lt.u32.totalorder %s3325_s13, %s3595_s26 }
 0x13e   : > { %p2781_p12 = scmp.ne.s32.totalorder %s3325_s13, %s2780_s3  ;;  %p2787_p0 = scmp.lt.u32.totalorder %s2785_s14, %s2780_s3 }
 0x13f   : > { %p2789_p5 = scmp.lt.u32.totalorder %s2780_s3, %s3325_s13 }
 0x140   : > { %p2783_p1 = pnand %p2782_p8, %p2781_p12  ;;  %p2788_p2 = por %p2787_p0, %p2786_p13 }
 0x142   : > { %p2784_p3 = pneg %p2783_p1  ;;  %p2790_p9 = por %p2789_p5, %p2788_p2 }
 0x144   : > { %p2791_p4 = pnand %p2790_p9, %p2784_p3 }
 0x146   : > { %2794 = shalt.err (!%p2791_p4)
}
 0x147   : > { %s2795_s30 = scalar_lea.vmem %s3327_s1, 768  ;;  %s2915_s16 = smov [#allocation2]  }
 0x148   : > { %p2796_p12 = scmp.ne.s32.totalorder %s3327_s1, %s2795_s30  ;;  %s2800_s22 = sshll.u32 %s2915_s16, 4  ;;  %s2801_s22 = int_to_ptr.vmem [resolvable:$false] %s2800_s22 }
 0x149   : > { %s2802_s4 = scalar_lea.vmem %s2801_s22, 1536  ;;  %p2803_p6 = scmp.lt.s32.totalorder %s3327_s1, %s2801_s22 }
 0x14a   : > { %p2798_p1 = pnand %p2796_p12, %p2782_p8  ;;  %p2804_p13 = scmp.lt.s32.totalorder %s2802_s4, %s2795_s30 }
 0x14c   : > { %p2799_p10 = pneg %p2798_p1  ;;  %p2805_p0 = por %p2804_p13, %p2803_p6 }
 0x14e   : > { %p2806_p2 = pnand %p2805_p0, %p2799_p10 }
 0x150   : > { %2809 = shalt.err (!%p2806_p2)
}
 0x151   : > { %2392 = dma.hbm_to_vmem [thread:$0]  (!%p3317_p11), %s3325_s13, 768, %s3327_s1, %s3329_s2, %s3585_s0, %s3585_s0, %s3587_s15  }
 0x152   : > { %s3596_s3 = sld [smem:[#allocation32_spill]] }
 0x158   : > { %p3597_p8 = scmp.ne.s32.totalorder %s3596_s3, 0 }
 0x159   : > { %s3363_s5 = sand.u32 (!%p3597_p8), 1, %s2892_s19  }
 0x15a   : > { %566 = sbr.rel (%p3597_p8) target bundleno = 2614 (0xa36), region = 80  ;;  %s569_s12 = scalar_lea.sflag (!%p3597_p8), [#allocation3], %s3363_s5 }
 0x15b   : > { %s2302_s17 = smul.u32 (!%p3597_p8), 48, %s3363_s5 }
 0x15d   : > { %s572_s25 = scalar_lea.vmem (!%p3597_p8), [#allocation2], %s2302_s17 }
 0x161   : > { %2855 = dma.done.wait (%p3303_p7), %s569_s12, 768  }
 0x162   : > { %2857 = vsyncadd (%p3303_p7), %s569_s12, 4294966528  ;;  %s3598_s2 = sld [smem:[#allocation31_spill]] }
 0x168   : > { %p3599_p6 = scmp.eq.s32.totalorder %s3598_s2, 0 }
 0x16a   : > { %2859 = dma.done.wait (%p3599_p6), [#allocation6], 512   ;;  %p3600_p10 = pmov %p3599_p6 }
 0x16b   : > { %p3601_p11 = pmov %p3599_p6 }
 0x16c   : > { %2861 = vsyncadd (%p3600_p10), [#allocation6], 4294966784 }
 0x16d   : > { %2863 = dma.done.wait (%p3601_p11), [#allocation9], 512   ;;  %p3602_p3 = pmov %p3599_p6 }
 0x16f   : > { %2865 = vsyncadd (%p3602_p3), [#allocation9], 4294966784  ;;  %p3603_p5 = pmov %p3602_p3 }
 0x170   : > { %p3604_p9 = pmov %p3602_p3 }
 0x171   : > { %2867 = dma.done.wait (%p3603_p5), [#allocation12], 256  }
 0x172   : > { %2869 = vsyncadd (%p3604_p9), [#allocation12], 4294967040  ;;  %p3605_p7 = pmov %p3602_p3 }
 0x173   : > { %p3606_p4 = pmov %p3602_p3 }
 0x174   : > { %2871 = dma.done.wait (%p3605_p7), [#allocation15], 512  }
 0x175   : > { %2873 = vsyncadd (%p3606_p4), [#allocation15], 4294966784  ;;  %p3607_p12 = pmov %p3602_p3 }
 0x176   : > { %p3608_p1 = pmov %p3602_p3 }
 0x177   : > { %2875 = dma.done.wait (%p3607_p12), [#allocation18], 256  }
 0x178   : > { %2877 = vsyncadd (%p3608_p1), [#allocation18], 4294967040  ;;  %p3609_p13 = pmov %p3608_p1 }
 0x179   : > { %p3610_p0 = pmov %p3608_p1 }
 0x17a   : > { %2879 = dma.done.wait (%p3609_p13), [#allocation21], 128  }
 0x17b   : > { %2881 = vsyncadd (%p3610_p0), [#allocation21], 4294967168  ;;  %v686_v0 = vld [vmem:[%s572_s25] sm:$0xff]  ;;  %v687_v1 = vld [vmem:[%s572_s25 + $0x8] sm:$0xff]  ;;  %vm726_vm0 = vcmask 130048   ;;  %v2916_v36 = vmov 0.0|0.0  }
 0x17c   : > { %v2092_v2 = vld [vmem:[%s572_s25 + $0x10] sm:$0xff]  ;;  %v2093_v3 = vld [vmem:[%s572_s25 + $0x18] sm:$0xff]  ;;  %v2094_v4 = vld [vmem:[%s572_s25 + $0x20] sm:$0xff]  ;;  %v694_v6 = vmul.f32 76.245, %v686_v0  ;;  %v716_v30 = vmul.f32 127.5, %v686_v0 }
 0x17d   : > { %v2095_v5 = vld [vmem:[%s572_s25 + $0x28] sm:$0xff]  ;;  %v695_v7 = vmul.f32 76.245, %v687_v1  ;;  %v696_v8 = vmul.f32 149.685, %v2092_v2  ;;  %v663_v14 = vld [vmem:[#allocation5] sm:$0xff] }
 0x17e   : > { %v697_v9 = vmul.f32 149.685, %v2093_v3  ;;  %v700_v10 = vmul.f32 29.07, %v2094_v4  ;;  %v701_v11 = vmul.f32 29.07, %v2095_v5  ;;  %2174 = vmatprep.mubr.msk.f32.mxu0 %vm726_vm0, %v663_v14 }
 0x17f   : > { %v698_v12 = vadd.f32 %v696_v8, %v694_v6  ;;  %v665_v15 = vld [vmem:[#allocation7] sm:$0xff]  ;;  %v666_v18 = vld [vmem:[#allocation7 + $0x8] sm:$0xff]  ;;  %v664_v23 = vld [vmem:[#allocation5 + $0x8] sm:$0xff]  ;;  %v706_v24 = vmul.f32 -43.02768, %v686_v0  ;;  %v712_v28 = vmul.f32 127.5, %v2094_v4 }
 0x180   : > { %v699_v13 = vadd.f32 %v697_v9, %v695_v7  ;;  %v3398_v19 = vpack.c.bf16 %v666_v18, %v665_v15  ;;  %v707_v25 = vmul.f32 -43.02768, %v687_v1  ;;  %v708_v26 = vmul.f32 -84.47232, %v2092_v2  ;;  %v679_v50 = vld [vmem:[#allocation20] sm:$0xff]  ;;  %v676_v52 = vld [vmem:[#allocation16 + $0x8] sm:$0xff] }
 0x181   : > { %v702_v16 = vadd.f32 %v700_v10, %v698_v12  ;;  %v709_v27 = vmul.f32 -84.47232, %v2093_v3  ;;  %v713_v29 = vmul.f32 127.5, %v2095_v5  ;;  %v717_v31 = vmul.f32 127.5, %v687_v1  ;;  %v667_v51 = vld [vmem:[#allocation8] sm:$0xff]  ;;  %v674_v6 = vld [vmem:[#allocation14 + $0x8] sm:$0xff] }
 0x182   : > { %v703_v17 = vadd.f32 %v701_v11, %v699_v13  ;;  %2267 = vmatprep.subr.bf16.mxu1 %v3398_v19  ;;  %v718_v32 = vmul.f32 -106.76544, %v2092_v2  ;;  %v719_v33 = vmul.f32 -106.76544, %v2093_v3  ;;  %v710_v34 = vadd.f32 %v708_v26, %v706_v24  ;;  %v675_v53 = vld [vmem:[#allocation16] sm:$0xff]  ;;  %v673_v8 = vld [vmem:[#allocation14] sm:$0xff] }
 0x183   : > { %v2096_v20 = vadd.f32 -128.0, %v702_v16  ;;  %2269 = vmatpush3.bf16.msra.mxu1 %v3398_v19  ;;  %v711_v35 = vadd.f32 %v709_v27, %v707_v25  ;;  %v722_v37 = vmul.f32 -20.73456, %v2094_v4  ;;  %v723_v38 = vmul.f32 -20.73456, %v2095_v5  ;;  %s3611_s23 = sld [smem:[#allocation39_spill]] }
 0x184   : > { %v2097_v21 = vadd.f32 -128.0, %v703_v17  ;;  %2274 = vmatprep.subr.bf16.mxu1 %v2916_v36  ;;  %v714_v39 = vadd.f32 %v712_v28, %v710_v34  ;;  %v720_v42 = vadd.f32 %v718_v32, %v716_v30  ;;  %v721_v43 = vadd.f32 %v719_v33, %v717_v31  ;;  %v668_v15 = vld [vmem:[#allocation8 + $0x8] sm:$0xff]  ;;  %s3566_s14 = smov 8   ;;  %v671_v25 = vld [vmem:[#allocation11] sm:$0xff]  ;;  %v669_v28 = vld [vmem:[#allocation10] sm:$0xff]  ;;  %s3612_s22 = sld [smem:[#allocation40_spill]] }
 0x185   : > { %v715_v40 = vadd.f32 %v713_v29, %v711_v35  ;;  %vm2917_vm1 = vmmov 0   ;;  %v2918_v49 = vmov 0.0   ;;  %vm1277_vm2 = vcmask 64512   ;;  %v670_v29 = vld [vmem:[#allocation10 + $0x8] sm:$0xff]  ;;  %s3613_s12 = sld [smem:[#allocation41_spill]]  ;;  %s2920_s1 = smov 112  }
 0x186   : > { %v2262_v22 = vpack.c.bf16 %v2097_v21, %v2096_v20  ;;  %v724_v44 = vadd.f32 %v722_v37, %v720_v42  ;;  %v725_v45 = vadd.f32 %v723_v38, %v721_v43  ;;  %v2290_v30 = vpack.c.bf16 %v670_v29, %v669_v28  ;;  %v678_v31 = vld [vmem:[#allocation19] sm:$0xff]  ;;  %v672_v42 = vld [vmem:[#allocation13] sm:$0xff]  ;;  %s3468_s30 = scalar_lea.vmem [#allocation22], %s2302_s17  ;;  %s2306_s17 = smul.u32 768, %s3598_s2 }
 0x187   : > { %v2275_v41 = vpack.c.bf16 %v715_v40, %v714_v39  ;;  %v677_v39 = vld [vmem:[#allocation17] sm:$0xff]  ;;  %s1887_s16 = sshll.u32 %s3468_s30, 4  ;;  %s3614_s25 = sld [smem:[#allocation42_spill]]  ;;  %s3480_s16 = int_to_ptr.vmem [resolvable:$true] %s1887_s16 }
 0x188   : > { %2263 = vmatprep.subr.bf16.mxu0 %v2262_v22  ;;  %v2281_v46 = vpack.c.bf16 %v725_v45, %v724_v44  ;;  %s1874_s2 = scalar_lea.sflag [#allocation4], %s3363_s5  ;;  %s2810_s15 = scalar_lea.vmem %s3480_s16, 768 }
 0x189   : > { %2265 = vmatpush3.bf16.msra.mxu0 %v2262_v22  ;;  %v680_v13 = vld [vmem:[%s3611_s23] sm:$0xff]  ;;  %v681_v14 = vld [vmem:[%s3611_s23 + $0x8] sm:$0xff]  ;;  %p2811_p2 = scmp.ne.s32.totalorder %s3480_s16, %s2810_s15  ;;  %p3615_p8 = scmp.ne.s32.totalorder %s3592_s29, 0 }
 0x18a   : > { %v2278_v16 = vpack.c.bf16 %v681_v14, %v680_v13  ;;  %v682_v45 = vld [vmem:[%s3612_s22] sm:$0xff]  ;;  %s2921_s13 = smov [#allocation22]  }
 0x18b   : > { %p2812_p6 = pnand %p2811_p2, %p3615_p8 }
 0x18c   : > { %2175 = vmatmul.mubr.msk.f32.vlgmr.msra.gmra.mrb[0].mxu0 %vm726_vm0, %v664_v23 }
 0x18d   : > { %2188 = vmatprep.mubr.msk.f32.mxu0 %vm726_vm0, %v667_v51  ;;  %s3485_s0 = scalar_lea.hbm %s3614_s25, %s2306_s17  ;;  %p2813_p10 = pneg %p2812_p6 }
 0x25f   : > { %v2176_v47 = vpop.f32.mrb[0].mxu0 }
 0x260   : > { %v799_v48 = vpop.f32.mrb[1].mxu0 }
 0x261   : > { %2181 = vmatprep.mubr.msk.f32.mxu1 %vm726_vm0, %v799_v48 }
 0x262   : > { %2182 = vmatmul.mubr.msk.f32.vlgmr.msra.gmra.mrb[0].mxu1 %vm726_vm0, %v2176_v47  ;;  %v685_v47 = vld [vmem:[%s3613_s12 + $0x8] sm:$0xff] }
 0x263   : > { %2276 = vmatpush3.bf16.msra.mxu1 %v2275_v41  ;;  %2195 = vmatprep.mubr.msk.f32.mxu1 %vm2917_vm1, %v2918_v49 }
 0x264   : > { %2280 = vmatprep.subr.bf16.mxu1 %v2916_v36 }
 0x266   : > { %2196 = vmatmul.mubr.msk.f32.vlgmr.msra.gmra.mrb[2].mxu1 %vm726_vm0, %v679_v50 }
 0x267   : > { %2282 = vmatpush3.bf16.msra.mxu1 %v2281_v46  ;;  %2209 = vmatprep.mubr.msk.f32.mxu1 %vm2917_vm1, %v2918_v49  ;;  %v684_v46 = vld [vmem:[%s3613_s12] sm:$0xff] }
 0x268   : > { %2219 = vmatprep.subr.mxu1 %v2918_v49  ;;  %v2292_v48 = vpack.c.bf16 %v685_v47, %v684_v46 }
 0x26a   : > { %2210 = vmatmul.mubr.msk.f32.vlgmr.msra.gmra.mrb[4].mxu1 %vm726_vm0, %v679_v50  ;;  %v683_v50 = vld [vmem:[%s3612_s22 + $0x8] sm:$0xff] }
 0x26b   : > { %2221 = vmatprep.mubr.msk.f32.mxu1 %vm2917_vm1, %v2918_v49 }
 0x335   : > { %v2183_v54 = vpop.f32.mrb[0].mxu1 }
 0x336   : > { %v890_v55 = vmul.f32 %v2183_v54, %v676_v52  ;;  %v880_v56 = vpop.f32.mrb[1].mxu1 }
 0x337   : > { %v889_v57 = vmul.f32 %v880_v56, %v675_v53 }
 0x338   : > { %v2304_v58 = vround.rtne.f32 %v890_v55 }
 0x339   : > { %v2303_v59 = vround.rtne.f32 %v889_v57  ;;  %v1053_v60 = vpop.f32.mrb[2].mxu1 }
 0x33a   : > { %v894_v61 = vsub.f32 %v890_v55, %v2304_v58  ;;  %v2197_v62 = vpop.f32.mrb[3].mxu1 }
 0x33b   : > { %v893_v63 = vsub.f32 %v889_v57, %v2303_v59 }
 0x33c   : > { %v896_v0 = vmul.f32 %v894_v61, %v894_v61 }
 0x33d   : > { %v895_v1 = vmul.f32 %v893_v63, %v893_v63  ;;  %v1196_v2 = vpop.f32.mrb[4].mxu1 }
 0x33e   : > { %v898_v3 = vmul.f32 %v896_v0, %v894_v61  ;;  %v2211_v4 = vpop.f32.mrb[5].mxu1 }
 0x33f   : > { %v897_v5 = vmul.f32 %v895_v1, %v893_v63 }
 0x340   : > { %v900_v7 = vadd.f32 %v2304_v58, %v898_v3 }
 0x341   : > { %v899_v9 = vadd.f32 %v2303_v59, %v897_v5 }
 0x342   : > { %v902_v10 = vmul.f32 %v900_v7, %v674_v6 }
 0x343   : > { %v901_v11 = vmul.f32 %v899_v9, %v673_v8 }
 0x345   : > { %v2270_v12 = vpack.c.bf16 %v902_v10, %v901_v11 }
 0x347   : > { %2271 = vmatprep.subr.bf16.mxu0 %v2270_v12 }
 0x348   : > { %2273 = vmatpush3.bf16.msra.mxu0 %v2270_v12 }
 0x349   : > { %2277 = vmatprep.subr.bf16.mxu0 %v2916_v36 }
 0x34b   : > { %2189 = vmatmul.mubr.msk.f32.vlgmr.msra.gmra.mrb[2].mxu0 %vm726_vm0, %v668_v15 }
 0x34c   : > { %2279 = vmatpush3.bf16.msra.mxu0 %v2278_v16  ;;  %2202 = vmatprep.mubr.msk.f32.mxu0 %vm2917_vm1, %v2918_v49 }
 0x34d   : > { %2283 = vmatprep.subr.bf16.mxu0 %v2916_v36 }
 0x34f   : > { %2203 = vmatmul.mubr.msk.f32.vlgmr.msra.gmra.mrb[4].mxu0 %vm726_vm0, %v1053_v60 }
 0x350   : > { %2285 = vmatpush3.bf16.msra.mxu0 %v2278_v16  ;;  %2216 = vmatprep.mubr.msk.f32.mxu0 %vm2917_vm1, %v2918_v49 }
 0x351   : > { %2286 = vmatprep.subr.bf16.mxu0 %v2916_v36 }
 0x353   : > { %2217 = vmatmul.mubr.msk.f32.vlgmr.msra.gmra.mrb[6].mxu0 %vm726_vm0, %v1196_v2 }
 0x354   : > { %2288 = vmatpush3.bf16.msra.mxu0 %v3398_v19  ;;  %2228 = vmatprep.mubr.msk.f32.mxu0 %vm2917_vm1, %v2918_v49 }
 0x355   : > { %2289 = vmatprep.subr.bf16.mxu0 %v2916_v36 }
 0x41e   : > { %v2190_v17 = vpop.f32.mrb[2].mxu0 }
 0x41f   : > { %v975_v18 = vpop.f32.mrb[3].mxu0 }
 0x422   : > { %v1126_v20 = vpop.f32.mrb[4].mxu0 }
 0x423   : > { %v2204_v21 = vpop.f32.mrb[5].mxu0 }
 0x426   : > { %v1269_v22 = vpop.f32.mrb[6].mxu0 }
 0x427   : > { %1274 = vrot.lane.b32.xlu0 %v1269_v22, %s3566_s14  ;;  %v2218_v23 = vpop.f32.mrb[7].mxu0 }
 0x499   : > { %v1275_v24 = vpop.permute.xlu0 %1274 }
 0x49a   : > { %v1278_v26 = vsel %vm1277_vm2, %v1126_v20, %v1275_v24 }
 0x49b   : > { %2220 = vmatpush3.msra.mxu1 %v1278_v26 }
 0x49c   : > { %2222 = vmatmul.mubr.msk.f32.vlgmr.msra.gmra.mrb[6].mxu1 %vm1277_vm2, %v671_v25  ;;  %2231 = vmatprep.subr.mxu1 %v2918_v49 }
 0x49d   : > { %2233 = vmatprep.mubr.msk.f32.mxu1 %vm2917_vm1, %v2918_v49 }
 0x56f   : > { %v1348_v19 = vpop.f32.mrb[6].mxu1 }
 0x570   : > { %v2223_v27 = vpop.f32.mrb[7].mxu1  ;;  %2229 = vmatmul.mubr.msk.f32.vlgmr.msra.gmra.mrb[8].mxu0 %vm726_vm0, %v1348_v19 }
 0x571   : > { %2240 = vmatprep.mubr.msk.f32.mxu0 %vm2917_vm1, %v2918_v49  ;;  %2291 = vmatpush3.bf16.msra.mxu0 %v2290_v30 }
 0x572   : > { %2293 = vmatprep.subr.bf16.mxu0 %v2292_v48 }
 0x643   : > { %v1421_v32 = vpop.f32.mrb[8].mxu0 }
 0x644   : > { %v1425_v33 = vmul.f32 %v1421_v32, %v678_v31  ;;  %v2230_v34 = vpop.f32.mrb[9].mxu0 }
 0x646   : > { %v2305_v35 = vround.rtne.f32 %v1425_v33 }
 0x648   : > { %v1427_v36 = vsub.f32 %v1425_v33, %v2305_v35 }
 0x64a   : > { %v1428_v37 = vmul.f32 %v1427_v36, %v1427_v36 }
 0x64c   : > { %v1429_v38 = vmul.f32 %v1428_v37, %v1427_v36 }
 0x64e   : > { %v1430_v40 = vadd.f32 %v2305_v35, %v1429_v38 }
 0x650   : > { %v1431_v41 = vmul.f32 %v1430_v40, %v677_v39 }
 0x652   : > { %2232 = vmatpush3.msra.mxu1 %v1431_v41 }
 0x653   : > { %2234 = vmatmul.mubr.msk.f32.vlgmr.msra.gmra.mrb[8].mxu1 %vm1277_vm2, %v672_v42 }
 0x654   : > { %2245 = vmatprep.mubr.msk.f32.mxu1 %vm1277_vm2, %v682_v45 }
 0x726   : > { %v1501_v43 = vpop.f32.mrb[8].mxu1 }
 0x727   : > { %v2235_v44 = vpop.f32.mrb[9].mxu1  ;;  %2241 = vmatmul.mubr.msk.f32.vlgmr.msra.gmra.mrb[10].mxu0 %vm726_vm0, %v1501_v43 }
 0x728   : > { %2295 = vmatpush3.bf16.msra.mxu0 %v2292_v48 }
 0x7fa   : > { %v1574_v49 = vpop.f32.mrb[10].mxu0 }
 0x7fb   : > { %v2242_v51 = vpop.f32.mrb[11].mxu0  ;;  %2243 = vmatprep.subr.mxu1 %v1574_v49 }
 0x7fc   : > { %2244 = vmatpush3.msra.mxu1 %v1574_v49 }
 0x7fd   : > { %2246 = vmatmul.mubr.msk.f32.vlgmr.msra.gmra.mrb[10].mxu1 %vm1277_vm2, %v683_v50  ;;  %2297 = vmatprep.subr.bf16.mxu1 %v2290_v30 }
 0x7fe   : > { %2299 = vmatpush3.bf16.msra.mxu1 %v2290_v30  ;;  %2259 = vmatprep.mubr.msk.f32.mxu1 %vm726_vm0, %v975_v18 }
 0x801   : > { %2260 = vmatmul.mubr.msk.f32.vlgmr.msra.gmra.mrb[12].mxu1 %vm726_vm0, %v2190_v17 }
 0x8d0   : > { %v2247_v52 = vpop.f32.mrb[10].mxu1 }
 0x8d1   : > { %v1650_v53 = vpop.f32.mrb[11].mxu1 }
 0x8d2   : > { %2252 = vmatprep.mubr.msk.f32.mxu0 %vm726_vm0, %v1650_v53 }
 0x8d3   : > { %2253 = vmatmul.mubr.msk.f32.vlgmr.msra.gmra.mrb[12].mxu0 %vm726_vm0, %v2247_v52 }
 0x8d4   : > { %v2261_v54 = vpop.f32.mrb[12].mxu1 }
 0x8d5   : > { %v1812_v55 = vpop.f32.mrb[13].mxu1  ;;  %v1818_v56 = vadd.f32 0.5019608, %v2261_v54 }
 0x8d6   : > { %v1813_v62 = vadd.f32 0.5019608, %v1812_v55 }
 0x9a6   : > { %v2254_v57 = vpop.f32.mrb[12].mxu0 }
 0x9a7   : > { %v1850_v58 = vmul.f32 1.772, %v2254_v57  ;;  %v1731_v59 = vpop.f32.mrb[13].mxu0  ;;  %v1822_v60 = vmul.f32 1.402, %v2254_v57 }
 0x9a8   : > { %v1821_v61 = vmul.f32 1.402, %v1731_v59  ;;  %v1849_v0 = vmul.f32 1.772, %v1731_v59  ;;  %v1837_v2 = vmul.f32 0.714136, %v1731_v59 }
 0x9a9   : > { %v1852_v63 = vadd.f32 %v1850_v58, %v1818_v56  ;;  %1827 = vrot.lane.b32.xlu1 %v1822_v60, %s2920_s1  ;;  %v1838_v4 = vmul.f32 0.714136, %v2254_v57  ;;  %v1833_v8 = vmul.f32 0.344136, %v1731_v59  ;;  %v1834_v10 = vmul.f32 0.344136, %v2254_v57 }
 0x9aa   : > { %1825 = vrot.lane.b32.xlu0 %v1821_v61, %s2920_s1  ;;  %v1851_v3 = vadd.f32 %v1849_v0, %v1813_v62 }
 0x9ab   : > { %v1867_v1 = vmax.f32 %v1852_v63, 0.0  ;;  %v1835_v15 = vsub.f32 %v1813_v62, %v1833_v8  ;;  %v1836_v18 = vsub.f32 %v1818_v56, %v1834_v10 }
 0x9ac   : > { %v1866_v6 = vmax.f32 %v1851_v3, 0.0 }
 0x9ad   : > { %v1869_v5 = vmin.f32 %v1867_v1, 1.0  ;;  %1841 = vrot.lane.b32.xlu1 %v1837_v2, %s2920_s1 }
 0x9ae   : > { %1843 = vrot.lane.b32.xlu0 %v1838_v4, %s2920_s1  ;;  %v1868_v7 = vmin.f32 %v1866_v6, 1.0  ;;  %s2814_s1 = sshll.u32 %s2921_s13, 4  ;;  %s2815_s1 = int_to_ptr.vmem [resolvable:$false] %s2814_s1 }
 0x9af   : > { %2121 = vst.msk [vmem:[%s3468_s30 + $0x28] sm:$0xff] %vm726_vm0, %v1869_v5  ;;  %s2816_s14 = scalar_lea.vmem %s2815_s1, 1536  ;;  %p2817_p11 = scmp.lt.s32.totalorder %s3480_s16, %s2815_s1 }
 0x9b0   : > { %2120 = vst.msk [vmem:[%s3468_s30 + $0x20] sm:$0xff] %vm726_vm0, %v1868_v7  ;;  %p2818_p3 = scmp.lt.s32.totalorder %s2816_s14, %s2810_s15 }
 0x9b2   : > { %p2819_p5 = por %p2818_p3, %p2817_p11 }
 0x9b4   : > { %p2820_p9 = pnand %p2819_p5, %p2813_p10 }
 0xa1b   : > { %v1828_v9 = vpop.permute.xlu1 %1827 }
 0xa1c   : > { %v1832_v11 = vadd.f32 %v1828_v9, %v1818_v56  ;;  %v1826_v12 = vpop.permute.xlu0 %1825 }
 0xa1d   : > { %v1831_v13 = vadd.f32 %v1826_v12, %v1813_v62 }
 0xa1e   : > { %v1854_v14 = vmax.f32 %v1832_v11, 0.0 }
 0xa1f   : > { %v1853_v16 = vmax.f32 %v1831_v13, 0.0  ;;  %v1842_v17 = vpop.permute.xlu1 %1841 }
 0xa20   : > { %v1856_v20 = vmin.f32 %v1854_v14, 1.0  ;;  %v1847_v21 = vsub.f32 %v1835_v15, %v1842_v17  ;;  %v1844_v22 = vpop.permute.xlu0 %1843 }
 0xa21   : > { %v1855_v23 = vmin.f32 %v1853_v16, 1.0  ;;  %v1848_v24 = vsub.f32 %v1836_v18, %v1844_v22 }
 0xa22   : > { %1858 = vst.msk [vmem:[%s3468_s30 + $0x8] sm:$0xff] %vm726_vm0, %v1856_v20  ;;  %v1859_v25 = vmax.f32 %v1847_v21, 0.0 }
 0xa23   : > { %1857 = vst.msk [vmem:[%s3468_s30] sm:$0xff] %vm726_vm0, %v1855_v23  ;;  %v1860_v26 = vmax.f32 %v1848_v24, 0.0 }
 0xa24   : > { %v1861_v19 = vmin.f32 %v1859_v25, 1.0 }
 0xa25   : > { %v1862_v27 = vmin.f32 %v1860_v26, 1.0 }
 0xa26   : > { %2118 = vst.msk [vmem:[%s3468_s30 + $0x10] sm:$0xff] %vm726_vm0, %v1861_v19 }
 0xa27   : > { %2119 = vst.msk [vmem:[%s3468_s30 + $0x18] sm:$0xff] %vm726_vm0, %v1862_v27 }
 0xa28   : > { %2823 = shalt.err (!%p2820_p9)
}
 0xa29   : > { %s2824_s30 = scalar_lea.hbm %s3485_s0, 768  ;;  %s2828_s3 = scalar_lea.hbm %s3614_s25, 1536 }
 0xa2a   : > { %p2825_p7 = scmp.ne.s32.totalorder %s3485_s0, %s2824_s30  ;;  %p2829_p1 = scmp.lt.u32.totalorder %s3485_s0, %s3614_s25 }
 0xa2b   : > { %p2830_p13 = scmp.lt.u32.totalorder %s2828_s3, %s2824_s30  ;;  %p2832_p2 = scmp.lt.u32.totalorder %s2824_s30, %s3485_s0 }
 0xa2c   : > { %p2826_p4 = pnand %p2825_p7, %p3615_p8 }
 0xa2d   : > { %p2831_p0 = por %p2830_p13, %p2829_p1 }
 0xa2e   : > { %p2827_p12 = pneg %p2826_p4 }
 0xa2f   : > { %p2833_p6 = por %p2832_p2, %p2831_p0 }
 0xa31   : > { %p2834_p10 = pnand %p2833_p6, %p2827_p12 }
 0xa33   : > { %2837 = shalt.err (!%p2834_p10)
}
 0xa34   : > { %s2922_s14 = smov 128   ;;  %s3616_s15 = smov 8  }
 0xa35   : > { %2353 = dma.vmem_to_hbm [thread:$0]  (%p3615_p8), %s3480_s16, 768, %s3485_s0, %s1874_s2, %s2922_s14, %s2922_s14, %s3616_s15  }
 0xa36 PF: > { %s1902_s17 = sand.u32 1, %s2888_s18   ;;  %p3617_p11 = scmp.ne.s32.totalorder %s3593_s24, 0 }
 0xa37   : > { %p3618_p3 = scmp.ge.s32.totalorder %s2900_s21, 2  ;;  %s1903_s30 = scalar_lea.sflag [#allocation4], %s1902_s17 }
 0xa39   : > { %p2394_p5 = pnand %p3618_p3, %p3617_p11 }
 0xa3b   : > { %2883 = dma.done.wait (!%p2394_p5), %s1903_s30, 768  }
 0xa3c   : > { %2885 = vsyncadd (!%p2394_p5), %s1903_s30, 4294966528  ;;  %p34_p9 = scmp.ge.s32.totalorder %s3287_s28, 4   ;;  %s3619_s18 = smov %s2892_s19 }
 0xa3d   : > { %s3620_s19 = smov %s2896_s20  ;;  %s3621_s20 = smov %s3299_s27 }
 0xa3e   : > { %s3622_s21 = smov %s3287_s28  ;;  %36 = sbr.rel (!%p34_p9) target bundleno = 22 (0x16), region = 173 }
 0xa45   :  { %1908 = vsyncpa [#allocation3], 1 }
 0xa46   :  { %1910 = vsyncpa [#allocation3 + $0x1], 1 }
 0xa47   :  { %1911 = vsyncpa [#allocation6], 1 }
 0xa48   :  { %1912 = vsyncpa [#allocation9], 1 }
 0xa49   :  { %1913 = vsyncpa [#allocation12], 1 }
 0xa4a   :  { %1914 = vsyncpa [#allocation15], 1 }
 0xa4b   :  { %1915 = vsyncpa [#allocation18], 1 }
 0xa4c   :  { %1916 = vsyncpa [#allocation21], 1 }
 0xa4d   :  { %1917 = vsyncpa [#allocation4], 1 }
 0xa4e   :  { %1919 = vsyncpa [#allocation4 + $0x1], 1 }

</bundles_post_ra>
